<compile_context>
chip_gen: v6e
topology: v6e:2x2x1
jax: 0.10.0
libtpu: 0.0.40
codegen_flags: <defaults>
</compile_context>

<pallas_src>
import functools

import jax
import jax.numpy as jnp
from jax.experimental import pallas as pl
from jax.experimental.pallas import tpu as pltpu

# ---------------- "cfg" constants (deterministic, in-script) ----------------
NUM_CLASS = 4
STRIDES = (8, 16, 32)
SCALE_FACTOR = 2.0
DELTA = 0.01

_SUB = 8          # compute sub-chunk rows: 1 f32 vreg per channel
_ROW_TERMS = 16   # 9 loss rows + 1 mask row + 6 zero pad rows (sublane align)


def _ceil_div(a, b):
    return -(-a // b)


def _bce_with_logits(x, t):
    # PyTorch BCEWithLogitsLoss (reduction='none'), numerically stable form.
    return jnp.maximum(x, 0.0) - x * t + jnp.log1p(jnp.exp(-jnp.abs(x)))


def _giou_cm(b1, b2):
    """GIOU for channel-leading boxes b1, b2 of shape (4, R, 128) = [x,y,w,h].
    Returns (1, R, 128)."""
    b1_min = b1[0:2] - b1[2:4] * 0.5
    b1_max = b1[0:2] + b1[2:4] * 0.5
    b2_min = b2[0:2] - b2[2:4] * 0.5
    b2_max = b2[0:2] + b2[2:4] * 0.5
    b1_lo = jnp.minimum(b1_min, b1_max)
    b1_hi = jnp.maximum(b1_min, b1_max)
    b2_lo = jnp.minimum(b2_min, b2_max)
    b2_hi = jnp.maximum(b2_min, b2_max)

    area1 = (b1_hi[0:1] - b1_lo[0:1]) * (b1_hi[1:2] - b1_lo[1:2])
    area2 = (b2_hi[0:1] - b2_lo[0:1]) * (b2_hi[1:2] - b2_lo[1:2])

    inter_lo = jnp.maximum(b1_lo, b2_lo)
    inter_hi = jnp.minimum(b1_hi, b2_hi)
    inter_wh = jnp.maximum(inter_hi - inter_lo, 0.0)
    inter = inter_wh[0:1] * inter_wh[1:2]

    union = area1 + area2 - inter
    iou = inter / (union + 1e-16)

    enc_lo = jnp.minimum(b1_lo, b2_lo)
    enc_hi = jnp.maximum(b1_hi, b2_hi)
    enc_wh = jnp.maximum(enc_hi - enc_lo, 0.0)
    enc = enc_wh[0:1] * enc_wh[1:2]
    return iou - (enc - union) / (enc + 1e-16)


def _loss_tile_kernel(ts_ref, tf_ref, tl_ref, consts_ref,   # scalar prefetch
                      x_ref, out_ref, acc_ref, *,
                      num_class, scale_factor, delta, sub_rows):
    """One (batch, tile) grid step on the fused 38-channel (rows,128) block.

    Accumulates 10 dense (sub_rows,128) row terms into VMEM scratch across the
    tiles of a scale; on the last tile, reduces sublanes and writes the
    (16,128) per-(batch,scale) partial slab once."""
    t = pl.program_id(1)
    sid = ts_ref[t]
    inv_stride = consts_ref[2 * sid]
    inv_img2 = consts_ref[2 * sid + 1]
    nc = num_class

    # Fused channel layout: [conf(1), cls(nc)] | p_d(13) | label(16+nc)
    C_CONF = 0
    C_CLS = 1
    C_PD = 1 + nc
    C_LAB = C_PD + 13

    @pl.when(tf_ref[t] == 1)
    def _init():
        acc_ref[...] = jnp.zeros_like(acc_ref)

    def process(r0):
        def ld(c0, n):
            return x_ref[0, c0:c0 + n, pl.ds(r0, sub_rows), :].astype(jnp.float32)

        p_conf = ld(C_CONF, 1)                 # (1,  R, 128)
        p_cls = ld(C_CLS, nc)                  # (NC, R, 128)
        pd_xywh = ld(C_PD, 4)
        pd_a = ld(C_PD + 4, 4)
        pd_r = ld(C_PD + 8, 1)
        pd_l = ld(C_PD + 9, 4)
        l_xywh = ld(C_LAB, 4)
        l_l1234 = ld(C_LAB + 4, 4)
        l_a = ld(C_LAB + 8, 4)
        l_r = ld(C_LAB + 12, 1)
        l_mask = ld(C_LAB + 13, 1)
        l_mix = ld(C_LAB + 14, 1)
        l_aw = ld(C_LAB + 15, 1)
        l_cls = ld(C_LAB + 16, nc)

        gh_mask = jnp.max(l_cls, axis=0, keepdims=True)           # (1,R,128)
        noobj = 1.0 - l_mask
        conf_smooth = l_mask * (1.0 - delta) + delta * 0.5
        cls_nonzero = (l_cls != 0).astype(jnp.float32)            # (NC,R,128)
        cls_smooth = cls_nonzero * (1.0 - delta) + delta * (1.0 / nc)
        area_weight = l_aw + noobj

        giou = _giou_cm(pd_xywh, l_xywh)                          # (1,R,128)
        bbox_scale = scale_factor - (scale_factor - 1.0) * \
            l_xywh[2:3] * l_xywh[3:4] * inv_img2
        scores_iou = bbox_scale * (1.0 - jnp.clip(giou, 0.0, 1.0))
        d_a = pd_a - l_a
        scores_obb = jnp.sum(d_a * d_a, axis=0, keepdims=True)    # VALU adds
        d_r = pd_r - l_r
        scores_area = d_r * d_r
        scores_loc = jnp.exp(-(scores_iou + scores_obb + scores_area))

        sig_pcls = jax.nn.sigmoid(p_cls)
        s_cl = sig_pcls * scores_loc
        scores_cls_loc = -jnp.log((1.0 - s_cl) / (s_cl + 1e-16) + 1e-16)
        offset0 = scores_loc   # torch.max over a size-1 last dim == identity

        # FocalLoss(gamma=2, alpha=1): BCEWithLogits * |t - sigmoid(x)|^2
        bce_conf = _bce_with_logits(p_conf, conf_smooth)
        fd = conf_smooth - jax.nn.sigmoid(p_conf)
        focal_conf = bce_conf * (fd * fd)

        bce_cls = _bce_with_logits(p_cls, cls_smooth)    # reused: neg & cls
        bce_scl = _bce_with_logits(scores_cls_loc, cls_smooth)

        base_w = l_mask * l_mix * area_weight
        weight_cls = jnp.sum(cls_nonzero * sig_pcls, axis=0, keepdims=True)
        wgh = (weight_cls + gh_mask) * 0.5
        base_wgh = base_w * wgh

        row_fg = l_mask * focal_conf * l_mix * (gh_mask + offset0) * 0.5
        row_bg = noobj * focal_conf * l_mix
        row_pos = jnp.sum(cls_nonzero * bce_scl, axis=0, keepdims=True) * base_w
        row_neg = jnp.sum((1.0 - cls_nonzero) * bce_cls, axis=0,
                          keepdims=True) * base_w
        row_iou = base_wgh * scores_iou
        row_cls = jnp.sum(bce_cls, axis=0, keepdims=True) * base_w
        row_s = base_wgh * scores_obb
        row_r = base_wgh * scores_area

        # nn.SmoothL1Loss(reduction='none'), default beta = 1.0
        n_l = jnp.abs(pd_l * inv_stride - l_l1234 * inv_stride)
        sl1 = jnp.where(n_l < 1.0, 0.5 * n_l * n_l, n_l - 0.5)
        row_l = jnp.sum(sl1, axis=0, keepdims=True) * (base_wgh * bbox_scale)

        acc_ref[0] += row_fg[0]
        acc_ref[1] += row_bg[0]
        acc_ref[2] += row_pos[0]
        acc_ref[3] += row_neg[0]
        acc_ref[4] += row_iou[0]
        acc_ref[5] += row_cls[0]
        acc_ref[6] += row_s[0]
        acc_ref[7] += row_r[0]
        acc_ref[8] += row_l[0]
        acc_ref[9] += l_mask[0]

    n_sub = x_ref.shape[2] // sub_rows
    if n_sub == 1:
        process(0)
    else:
        @pl.loop(0, n_sub, unroll=True)
        def _body(si):
            process(pl.multiple_of(si * sub_rows, sub_rows))

    @pl.when(tl_ref[t] == 1)
    def _finalize():
        # Sublane-fold the dense accumulator once per (batch, scale).
        out_ref[0, 0] = jnp.sum(acc_ref[...], axis=1)      # (16, 128)


def _pick_tile_rows(r_max):
    """DMA tile size in 128-lane rows: biggest of {32,16,8} that still gives
    >= 2 tiles on the largest scale (amortize ~0.35us/step overhead)."""
    for cand in (32, 16):
        if r_max >= 2 * cand:
            return cand
    return _SUB


def loss_forward(p, p_d, label_sbbox, label_mbbox, label_lbbox, epoch=0, i=0,
                 strides=STRIDES, num_class=NUM_CLASS,
                 scale_factor=SCALE_FACTOR, delta=DELTA):
    """Mirrors Loss.forward; returns the 10-tuple of scalar losses."""
    del epoch, i  # unused in the reference __cal_loss body
    labels = [label_sbbox, label_mbbox, label_lbbox]
    B = p[0].shape[0]
    n_ch = (1 + num_class) + 13 + (16 + num_class)   # 38 for NUM_CLASS=4

    r_raw = [_ceil_div(int(p[k].shape[1]) ** 2, 128) for k in range(3)]
    TR = _pick_tile_rows(max(r_raw))

    parts = []
    tile_scale, tile_first, tile_last, consts = [], [], [], []
    for k in range(3):
        g = int(p[k].shape[1])
        S = g * g
        stride = float(strides[k])
        img = stride * g
        consts += [1.0 / stride, 1.0 / (img * img)]

        Rp = _ceil_div(S, TR * 128) * TR       # rows, padded to tile multiple
        Sp = Rp * 128

        # One fused channel-major buffer per scale (concat+transpose+pad fuse
        # under jit).  Zero padding => label_mask = label_mix = 0 so every
        # loss/mask contribution in the pad region is exactly 0.
        cat = jnp.concatenate([p[k][..., 9:], p_d[k], labels[k]], axis=-1)
        x = jnp.transpose(cat.reshape(B, S, n_ch), (0, 2, 1))     # (B, C, S)
        if Sp > S:
            x = jnp.pad(x, ((0, 0), (0, 0), (0, Sp - S)))
        parts.append(x.reshape(B, n_ch, Rp, 128))

        nt = Rp // TR
        tile_scale += [k] * nt
        tile_first += [1] + [0] * (nt - 1)
        tile_last += [0] * (nt - 1) + [1]

    x_cat = jnp.concatenate(parts, axis=2)     # (B, C, R_total, 128)
    R_total = x_cat.shape[2]
    n_tiles = len(tile_scale)

    ts_a = jnp.asarray(tile_scale, jnp.int32)
    tf_a = jnp.asarray(tile_first, jnp.int32)
    tl_a = jnp.asarray(tile_last, jnp.int32)
    cs_a = jnp.asarray(consts, jnp.float32)    # [1/stride, 1/img^2] x 3

    kernel = functools.partial(_loss_tile_kernel, num_class=num_class,
                               scale_factor=scale_factor, delta=delta,
                               sub_rows=_SUB)

    elems = B * R_total * 128
    cost = pl.CostEstimate(
        flops=int(elems * 260),
        transcendentals=int(elems * (4 * num_class + 8)),
        bytes_accessed=int(x_cat.size * x_cat.dtype.itemsize
                           + B * 3 * _ROW_TERMS * 128 * 4),
    )

    sums = pl.pallas_call(
        kernel,
        out_shape=jax.ShapeDtypeStruct((B, 3, _ROW_TERMS, 128), jnp.float32),
        grid_spec=pltpu.PrefetchScalarGridSpec(
            num_scalar_prefetch=4,
            grid=(B, n_tiles),
            in_specs=[
                pl.BlockSpec((1, n_ch, TR, 128),
                             lambda b, t, ts, tf, tl, cs: (b, 0, t, 0)),
            ],
            out_specs=pl.BlockSpec((1, 1, _ROW_TERMS, 128),
                                   lambda b, t, ts, tf, tl, cs:
                                   (b, ts[t], 0, 0)),
            scratch_shapes=[pltpu.VMEM((_ROW_TERMS, _SUB, 128), jnp.float32)],
        ),
        compiler_params=pltpu.CompilerParams(
            dimension_semantics=("parallel", "arbitrary")),
        cost_estimate=cost,
    )(ts_a, tf_a, tl_a, cs_a, x_cat)

    # ------- tiny per-(batch, scale) normalization glue (plain JAX) -------
    per = jnp.sum(sums, axis=-1)                        # (B, 3, 16)
    mask_sum = per[:, :, 9]                             # (B, 3)
    N = jnp.maximum(mask_sum + 1e-16, 1.0)
    terms = jnp.sum(per[:, :, :9] / N[:, :, None], axis=0) / B   # (3, 9)
    weights = jnp.asarray([2.0, 2.0, 1.0, 1.0, 1.0, 1.0, 1.0, 16.0, 0.2],
                          jnp.float32)
    total_terms = jnp.sum(terms * weights[None, :], axis=0)      # (9,)
    total_loss = jnp.sum(total_terms)
    # order: loss, fg, bg, pos, neg, iou, cls, s, r, l
    return (total_loss,) + tuple(total_terms[j] for j in range(9))


def _make_scale_inputs(key, B, g, img, nc):
    ks = jax.random.split(key, 15)
    p = jax.random.normal(ks[0], (B, g, g, 10 + nc), jnp.float32)

    pd_xy = jax.random.uniform(ks[1], (B, g, g, 2), minval=0.0, maxval=float(img))
    pd_wh = jax.random.uniform(ks[2], (B, g, g, 2), minval=2.0, maxval=img / 2.0)
    pd_a = jax.random.uniform(ks[3], (B, g, g, 4))
    pd_r = jax.random.uniform(ks[4], (B, g, g, 1))
    pd_l = jax.random.uniform(ks[5], (B, g, g, 4), minval=0.0, maxval=float(img))
    p_d = jnp.concatenate([pd_xy, pd_wh, pd_a, pd_r, pd_l], axis=-1)

    lb_xy = jax.random.uniform(ks[6], (B, g, g, 2), minval=0.0, maxval=float(img))
    lb_wh = jax.random.uniform(ks[7], (B, g, g, 2), minval=1.0, maxval=img / 4.0)
    lb_l = jax.random.uniform(ks[8], (B, g, g, 4), minval=0.0, maxval=float(img))
    lb_a = jax.random.uniform(ks[9], (B, g, g, 4))
    lb_r = jax.random.uniform(ks[10], (B, g, g, 1))
    mask = jax.random.bernoulli(ks[11], 0.3, (B, g, g, 1)).astype(jnp.float32)
    mix = jnp.ones((B, g, g, 1), jnp.float32)
    aw = jax.random.uniform(ks[12], (B, g, g, 1), minval=0.5, maxval=1.5)
    cls = (jax.random.uniform(ks[13], (B, g, g, nc)) *
           jax.random.bernoulli(ks[14], 0.5, (B, g, g, nc)).astype(jnp.float32))
    label = jnp.concatenate([lb_xy, lb_wh, lb_l, lb_a, lb_r, mask, mix, aw, cls],
                            axis=-1)
    return p, p_d, label


if __name__ == "__main__":
    B = 2
    IMG = 128
    key = jax.random.PRNGKey(0)
    k_s, k_m, k_l = jax.random.split(key, 3)

    p_list, pd_list, lab_list = [], [], []
    for kk, s in zip((k_s, k_m, k_l), STRIDES):
        g = IMG // s
        pk, pdk, labk = _make_scale_inputs(kk, B, g, IMG, NUM_CLASS)
        p_list.append(pk)
        pd_list.append(pdk)
        lab_list.append(labk)

    loss_fn = jax.jit(loss_forward)
    out = loss_fn(p_list, pd_list, lab_list[0], lab_list[1], lab_list[2], 0, 0)
    jax.block_until_ready(out)
    print("KERNEL_OK")
</pallas_src>

<mosaic_0001>
module attributes {stable_mosaic.version = 11 : i64} {
  func.func @_loss_tile_kernel(%arg0: i32, %arg1: i32, %arg2: memref<3xi32, #tpu.memory_space<smem>>, %arg3: memref<3xi32, #tpu.memory_space<smem>>, %arg4: memref<3xi32, #tpu.memory_space<smem>>, %arg5: memref<6xf32, #tpu.memory_space<smem>>, %arg6: memref<1x38x8x128xf32, #tpu.memory_space<vmem>>, %arg7: memref<1x1x16x128xf32, #tpu.memory_space<vmem>>, %arg8: memref<16x8x128xf32, #tpu.memory_space<vmem>>) attributes {dimension_semantics = [#tpu.dimension_semantics<parallel>, #tpu.dimension_semantics<arbitrary>], iteration_bounds = array<i64: 2, 3>, scalar_prefetch = 4 : i64, scratch_operands = 1 : i64, tpu.core_type = #tpu.core_type<tc>, window_params = [{transform_indices = @transform_0, window_bounds = array<i64: 1, 38, 8, 128>}, {transform_indices = @transform_1, window_bounds = array<i64: 1, 1, 16, 128>}]} {
    %0 = arith.index_cast %arg1 : i32 to index
    %1 = memref.load %arg2[%0] : memref<3xi32, #tpu.memory_space<smem>>
    %c2_i32 = arith.constant 2 : i32
    %2 = arith.muli %c2_i32, %1 : i32
    %3 = arith.index_cast %2 : i32 to index
    %4 = memref.load %arg5[%3] : memref<6xf32, #tpu.memory_space<smem>>
    %c2_i32_0 = arith.constant 2 : i32
    %5 = arith.muli %c2_i32_0, %1 : i32
    %c1_i32 = arith.constant 1 : i32
    %6 = arith.addi %5, %c1_i32 : i32
    %7 = arith.index_cast %6 : i32 to index
    %8 = memref.load %arg5[%7] : memref<6xf32, #tpu.memory_space<smem>>
    %9 = arith.index_cast %arg1 : i32 to index
    %10 = memref.load %arg3[%9] : memref<3xi32, #tpu.memory_space<smem>>
    %c1_i32_1 = arith.constant 1 : i32
    %11 = arith.cmpi eq, %10, %c1_i32_1 : i32
    %12 = arith.extui %11 : i1 to i32
    %c0_i32 = arith.constant 0 : i32
    %13 = arith.cmpi ne, %12, %c0_i32 : i32
    scf.if %13 {
      %cst_144 = arith.constant 0.000000e+00 : f32
      %331 = vector.broadcast %cst_144 : f32 to vector<16x8x128xf32>
      %c0_145 = arith.constant 0 : index
      %c0_146 = arith.constant 0 : index
      %c0_147 = arith.constant 0 : index
      %332 = vector.load %arg8[%c0_145, %c0_146, %c0_147] : memref<16x8x128xf32, #tpu.memory_space<vmem>>, vector<16x8x128xf32>
      tpu.vector_store %arg8[%c0_145, %c0_146, %c0_147], %331 {strides = array<i32>} : memref<16x8x128xf32, #tpu.memory_space<vmem>>, vector<16x8x128xf32>,
    } else {
    }
    %c0 = arith.constant 0 : index
    %c0_2 = arith.constant 0 : index
    %c0_3 = arith.constant 0 : index
    %c0_4 = arith.constant 0 : index
    %14 = vector.load %arg6[%c0, %c0_2, %c0_3, %c0_4] : memref<1x38x8x128xf32, #tpu.memory_space<vmem>>, vector<1x1x8x128xf32>
    %15 = vector.shape_cast %14 : vector<1x1x8x128xf32> to vector<1x8x128xf32>
    %c0_5 = arith.constant 0 : index
    %c1 = arith.constant 1 : index
    %c0_6 = arith.constant 0 : index
    %c0_7 = arith.constant 0 : index
    %16 = vector.load %arg6[%c0_5, %c1, %c0_6, %c0_7] : memref<1x38x8x128xf32, #tpu.memory_space<vmem>>, vector<1x4x8x128xf32>
    %17 = vector.shape_cast %16 : vector<1x4x8x128xf32> to vector<4x8x128xf32>
    %c0_8 = arith.constant 0 : index
    %c5 = arith.constant 5 : index
    %c0_9 = arith.constant 0 : index
    %c0_10 = arith.constant 0 : index
    %18 = vector.load %arg6[%c0_8, %c5, %c0_9, %c0_10] : memref<1x38x8x128xf32, #tpu.memory_space<vmem>>, vector<1x4x8x128xf32>
    %19 = vector.shape_cast %18 : vector<1x4x8x128xf32> to vector<4x8x128xf32>
    %c0_11 = arith.constant 0 : index
    %c9 = arith.constant 9 : index
    %c0_12 = arith.constant 0 : index
    %c0_13 = arith.constant 0 : index
    %20 = vector.load %arg6[%c0_11, %c9, %c0_12, %c0_13] : memref<1x38x8x128xf32, #tpu.memory_space<vmem>>, vector<1x4x8x128xf32>
    %21 = vector.shape_cast %20 : vector<1x4x8x128xf32> to vector<4x8x128xf32>
    %c0_14 = arith.constant 0 : index
    %c13 = arith.constant 13 : index
    %c0_15 = arith.constant 0 : index
    %c0_16 = arith.constant 0 : index
    %22 = vector.load %arg6[%c0_14, %c13, %c0_15, %c0_16] : memref<1x38x8x128xf32, #tpu.memory_space<vmem>>, vector<1x1x8x128xf32>
    %23 = vector.shape_cast %22 : vector<1x1x8x128xf32> to vector<1x8x128xf32>
    %c0_17 = arith.constant 0 : index
    %c14 = arith.constant 14 : index
    %c0_18 = arith.constant 0 : index
    %c0_19 = arith.constant 0 : index
    %24 = vector.load %arg6[%c0_17, %c14, %c0_18, %c0_19] : memref<1x38x8x128xf32, #tpu.memory_space<vmem>>, vector<1x4x8x128xf32>
    %25 = vector.shape_cast %24 : vector<1x4x8x128xf32> to vector<4x8x128xf32>
    %c0_20 = arith.constant 0 : index
    %c18 = arith.constant 18 : index
    %c0_21 = arith.constant 0 : index
    %c0_22 = arith.constant 0 : index
    %26 = vector.load %arg6[%c0_20, %c18, %c0_21, %c0_22] : memref<1x38x8x128xf32, #tpu.memory_space<vmem>>, vector<1x4x8x128xf32>
    %27 = vector.shape_cast %26 : vector<1x4x8x128xf32> to vector<4x8x128xf32>
    %c0_23 = arith.constant 0 : index
    %c22 = arith.constant 22 : index
    %c0_24 = arith.constant 0 : index
    %c0_25 = arith.constant 0 : index
    %28 = vector.load %arg6[%c0_23, %c22, %c0_24, %c0_25] : memref<1x38x8x128xf32, #tpu.memory_space<vmem>>, vector<1x4x8x128xf32>
    %29 = vector.shape_cast %28 : vector<1x4x8x128xf32> to vector<4x8x128xf32>
    %c0_26 = arith.constant 0 : index
    %c26 = arith.constant 26 : index
    %c0_27 = arith.constant 0 : index
    %c0_28 = arith.constant 0 : index
    %30 = vector.load %arg6[%c0_26, %c26, %c0_27, %c0_28] : memref<1x38x8x128xf32, #tpu.memory_space<vmem>>, vector<1x4x8x128xf32>
    %31 = vector.shape_cast %30 : vector<1x4x8x128xf32> to vector<4x8x128xf32>
    %c0_29 = arith.constant 0 : index
    %c30 = arith.constant 30 : index
    %c0_30 = arith.constant 0 : index
    %c0_31 = arith.constant 0 : index
    %32 = vector.load %arg6[%c0_29, %c30, %c0_30, %c0_31] : memref<1x38x8x128xf32, #tpu.memory_space<vmem>>, vector<1x1x8x128xf32>
    %33 = vector.shape_cast %32 : vector<1x1x8x128xf32> to vector<1x8x128xf32>
    %c0_32 = arith.constant 0 : index
    %c31 = arith.constant 31 : index
    %c0_33 = arith.constant 0 : index
    %c0_34 = arith.constant 0 : index
    %34 = vector.load %arg6[%c0_32, %c31, %c0_33, %c0_34] : memref<1x38x8x128xf32, #tpu.memory_space<vmem>>, vector<1x1x8x128xf32>
    %35 = vector.shape_cast %34 : vector<1x1x8x128xf32> to vector<1x8x128xf32>
    %c0_35 = arith.constant 0 : index
    %c32 = arith.constant 32 : index
    %c0_36 = arith.constant 0 : index
    %c0_37 = arith.constant 0 : index
    %36 = vector.load %arg6[%c0_35, %c32, %c0_36, %c0_37] : memref<1x38x8x128xf32, #tpu.memory_space<vmem>>, vector<1x1x8x128xf32>
    %37 = vector.shape_cast %36 : vector<1x1x8x128xf32> to vector<1x8x128xf32>
    %c0_38 = arith.constant 0 : index
    %c33 = arith.constant 33 : index
    %c0_39 = arith.constant 0 : index
    %c0_40 = arith.constant 0 : index
    %38 = vector.load %arg6[%c0_38, %c33, %c0_39, %c0_40] : memref<1x38x8x128xf32, #tpu.memory_space<vmem>>, vector<1x1x8x128xf32>
    %39 = vector.shape_cast %38 : vector<1x1x8x128xf32> to vector<1x8x128xf32>
    %c0_41 = arith.constant 0 : index
    %c34 = arith.constant 34 : index
    %c0_42 = arith.constant 0 : index
    %c0_43 = arith.constant 0 : index
    %40 = vector.load %arg6[%c0_41, %c34, %c0_42, %c0_43] : memref<1x38x8x128xf32, #tpu.memory_space<vmem>>, vector<1x4x8x128xf32>
    %41 = vector.shape_cast %40 : vector<1x4x8x128xf32> to vector<4x8x128xf32>
    %cst = arith.constant dense<0xFF800000> : vector<8x128xf32>
    %42 = vector.multi_reduction <maximumf>, %41, %cst [0] : vector<4x8x128xf32> to vector<8x128xf32>
    %43 = vector.shape_cast %42 : vector<8x128xf32> to vector<1x8x128xf32>
    %cst_44 = arith.constant 1.000000e+00 : f32
    %44 = vector.broadcast %cst_44 : f32 to vector<1x8x128xf32>
    %45 = arith.subf %44, %35 : vector<1x8x128xf32>
    %cst_45 = arith.constant 9.900000e-01 : f32
    %46 = vector.broadcast %cst_45 : f32 to vector<1x8x128xf32>
    %47 = arith.mulf %35, %46 : vector<1x8x128xf32>
    %cst_46 = arith.constant 5.000000e-03 : f32
    %48 = vector.broadcast %cst_46 : f32 to vector<1x8x128xf32>
    %49 = arith.addf %47, %48 : vector<1x8x128xf32>
    %cst_47 = arith.constant 0.000000e+00 : f32
    %50 = vector.broadcast %cst_47 : f32 to vector<4x8x128xf32>
    %51 = arith.cmpf one, %41, %50 : vector<4x8x128xf32>
    %52 = arith.extui %51 : vector<4x8x128xi1> to vector<4x8x128xi32>
    %53 = arith.sitofp %52 : vector<4x8x128xi32> to vector<4x8x128xf32>
    %cst_48 = arith.constant 9.900000e-01 : f32
    %54 = vector.broadcast %cst_48 : f32 to vector<4x8x128xf32>
    %55 = arith.mulf %53, %54 : vector<4x8x128xf32>
    %cst_49 = arith.constant 2.500000e-03 : f32
    %56 = vector.broadcast %cst_49 : f32 to vector<4x8x128xf32>
    %57 = arith.addf %55, %56 : vector<4x8x128xf32>
    %58 = arith.addf %39, %45 : vector<1x8x128xf32>
    %59 = vector.extract_strided_slice %19 {offsets = [0, 0, 0], sizes = [2, 8, 128], strides = [1, 1, 1]} : vector<4x8x128xf32> to vector<2x8x128xf32>
    %60 = vector.extract_strided_slice %19 {offsets = [2, 0, 0], sizes = [2, 8, 128], strides = [1, 1, 1]} : vector<4x8x128xf32> to vector<2x8x128xf32>
    %cst_50 = arith.constant 5.000000e-01 : f32
    %61 = vector.broadcast %cst_50 : f32 to vector<2x8x128xf32>
    %62 = arith.mulf %60, %61 : vector<2x8x128xf32>
    %63 = arith.subf %59, %62 : vector<2x8x128xf32>
    %64 = vector.extract_strided_slice %19 {offsets = [0, 0, 0], sizes = [2, 8, 128], strides = [1, 1, 1]} : vector<4x8x128xf32> to vector<2x8x128xf32>
    %65 = vector.extract_strided_slice %19 {offsets = [2, 0, 0], sizes = [2, 8, 128], strides = [1, 1, 1]} : vector<4x8x128xf32> to vector<2x8x128xf32>
    %cst_51 = arith.constant 5.000000e-01 : f32
    %66 = vector.broadcast %cst_51 : f32 to vector<2x8x128xf32>
    %67 = arith.mulf %65, %66 : vector<2x8x128xf32>
    %68 = arith.addf %64, %67 : vector<2x8x128xf32>
    %69 = vector.extract_strided_slice %27 {offsets = [0, 0, 0], sizes = [2, 8, 128], strides = [1, 1, 1]} : vector<4x8x128xf32> to vector<2x8x128xf32>
    %70 = vector.extract_strided_slice %27 {offsets = [2, 0, 0], sizes = [2, 8, 128], strides = [1, 1, 1]} : vector<4x8x128xf32> to vector<2x8x128xf32>
    %cst_52 = arith.constant 5.000000e-01 : f32
    %71 = vector.broadcast %cst_52 : f32 to vector<2x8x128xf32>
    %72 = arith.mulf %70, %71 : vector<2x8x128xf32>
    %73 = arith.subf %69, %72 : vector<2x8x128xf32>
    %74 = vector.extract_strided_slice %27 {offsets = [0, 0, 0], sizes = [2, 8, 128], strides = [1, 1, 1]} : vector<4x8x128xf32> to vector<2x8x128xf32>
    %75 = vector.extract_strided_slice %27 {offsets = [2, 0, 0], sizes = [2, 8, 128], strides = [1, 1, 1]} : vector<4x8x128xf32> to vector<2x8x128xf32>
    %cst_53 = arith.constant 5.000000e-01 : f32
    %76 = vector.broadcast %cst_53 : f32 to vector<2x8x128xf32>
    %77 = arith.mulf %75, %76 : vector<2x8x128xf32>
    %78 = arith.addf %74, %77 : vector<2x8x128xf32>
    %79 = arith.minimumf %63, %68 : vector<2x8x128xf32>
    %80 = arith.maximumf %63, %68 : vector<2x8x128xf32>
    %81 = arith.minimumf %73, %78 : vector<2x8x128xf32>
    %82 = arith.maximumf %73, %78 : vector<2x8x128xf32>
    %83 = vector.extract_strided_slice %80 {offsets = [0, 0, 0], sizes = [1, 8, 128], strides = [1, 1, 1]} : vector<2x8x128xf32> to vector<1x8x128xf32>
    %84 = vector.extract_strided_slice %79 {offsets = [0, 0, 0], sizes = [1, 8, 128], strides = [1, 1, 1]} : vector<2x8x128xf32> to vector<1x8x128xf32>
    %85 = arith.subf %83, %84 : vector<1x8x128xf32>
    %86 = vector.extract_strided_slice %80 {offsets = [1, 0, 0], sizes = [1, 8, 128], strides = [1, 1, 1]} : vector<2x8x128xf32> to vector<1x8x128xf32>
    %87 = vector.extract_strided_slice %79 {offsets = [1, 0, 0], sizes = [1, 8, 128], strides = [1, 1, 1]} : vector<2x8x128xf32> to vector<1x8x128xf32>
    %88 = arith.subf %86, %87 : vector<1x8x128xf32>
    %89 = arith.mulf %85, %88 : vector<1x8x128xf32>
    %90 = vector.extract_strided_slice %82 {offsets = [0, 0, 0], sizes = [1, 8, 128], strides = [1, 1, 1]} : vector<2x8x128xf32> to vector<1x8x128xf32>
    %91 = vector.extract_strided_slice %81 {offsets = [0, 0, 0], sizes = [1, 8, 128], strides = [1, 1, 1]} : vector<2x8x128xf32> to vector<1x8x128xf32>
    %92 = arith.subf %90, %91 : vector<1x8x128xf32>
    %93 = vector.extract_strided_slice %82 {offsets = [1, 0, 0], sizes = [1, 8, 128], strides = [1, 1, 1]} : vector<2x8x128xf32> to vector<1x8x128xf32>
    %94 = vector.extract_strided_slice %81 {offsets = [1, 0, 0], sizes = [1, 8, 128], strides = [1, 1, 1]} : vector<2x8x128xf32> to vector<1x8x128xf32>
    %95 = arith.subf %93, %94 : vector<1x8x128xf32>
    %96 = arith.mulf %92, %95 : vector<1x8x128xf32>
    %97 = arith.maximumf %79, %81 : vector<2x8x128xf32>
    %98 = arith.minimumf %80, %82 : vector<2x8x128xf32>
    %99 = arith.subf %98, %97 : vector<2x8x128xf32>
    %cst_54 = arith.constant 0.000000e+00 : f32
    %100 = vector.broadcast %cst_54 : f32 to vector<2x8x128xf32>
    %101 = arith.maximumf %99, %100 : vector<2x8x128xf32>
    %102 = vector.extract_strided_slice %101 {offsets = [0, 0, 0], sizes = [1, 8, 128], strides = [1, 1, 1]} : vector<2x8x128xf32> to vector<1x8x128xf32>
    %103 = vector.extract_strided_slice %101 {offsets = [1, 0, 0], sizes = [1, 8, 128], strides = [1, 1, 1]} : vector<2x8x128xf32> to vector<1x8x128xf32>
    %104 = arith.mulf %102, %103 : vector<1x8x128xf32>
    %105 = arith.addf %89, %96 : vector<1x8x128xf32>
    %106 = arith.subf %105, %104 : vector<1x8x128xf32>
    %cst_55 = arith.constant 1.000000e-16 : f32
    %107 = vector.broadcast %cst_55 : f32 to vector<1x8x128xf32>
    %108 = arith.addf %106, %107 : vector<1x8x128xf32>
    %109 = arith.divf %104, %108 : vector<1x8x128xf32>
    %110 = arith.minimumf %79, %81 : vector<2x8x128xf32>
    %111 = arith.maximumf %80, %82 : vector<2x8x128xf32>
    %112 = arith.subf %111, %110 : vector<2x8x128xf32>
    %cst_56 = arith.constant 0.000000e+00 : f32
    %113 = vector.broadcast %cst_56 : f32 to vector<2x8x128xf32>
    %114 = arith.maximumf %112, %113 : vector<2x8x128xf32>
    %115 = vector.extract_strided_slice %114 {offsets = [0, 0, 0], sizes = [1, 8, 128], strides = [1, 1, 1]} : vector<2x8x128xf32> to vector<1x8x128xf32>
    %116 = vector.extract_strided_slice %114 {offsets = [1, 0, 0], sizes = [1, 8, 128], strides = [1, 1, 1]} : vector<2x8x128xf32> to vector<1x8x128xf32>
    %117 = arith.mulf %115, %116 : vector<1x8x128xf32>
    %118 = arith.subf %117, %106 : vector<1x8x128xf32>
    %cst_57 = arith.constant 1.000000e-16 : f32
    %119 = vector.broadcast %cst_57 : f32 to vector<1x8x128xf32>
    %120 = arith.addf %117, %119 : vector<1x8x128xf32>
    %121 = arith.divf %118, %120 : vector<1x8x128xf32>
    %122 = arith.subf %109, %121 : vector<1x8x128xf32>
    %123 = vector.extract_strided_slice %27 {offsets = [2, 0, 0], sizes = [1, 8, 128], strides = [1, 1, 1]} : vector<4x8x128xf32> to vector<1x8x128xf32>
    %cst_58 = arith.constant 1.000000e+00 : f32
    %124 = vector.broadcast %cst_58 : f32 to vector<1x8x128xf32>
    %125 = arith.mulf %124, %123 : vector<1x8x128xf32>
    %126 = vector.extract_strided_slice %27 {offsets = [3, 0, 0], sizes = [1, 8, 128], strides = [1, 1, 1]} : vector<4x8x128xf32> to vector<1x8x128xf32>
    %127 = arith.mulf %125, %126 : vector<1x8x128xf32>
    %128 = vector.broadcast %8 : f32 to vector<1x8x128xf32>
    %129 = arith.mulf %127, %128 : vector<1x8x128xf32>
    %cst_59 = arith.constant 2.000000e+00 : f32
    %130 = vector.broadcast %cst_59 : f32 to vector<1x8x128xf32>
    %131 = arith.subf %130, %129 : vector<1x8x128xf32>
    %cst_60 = arith.constant 0.000000e+00 : f32
    %cst_61 = arith.constant 1.000000e+00 : f32
    %132 = vector.broadcast %cst_60 : f32 to vector<1x8x128xf32>
    %133 = arith.maximumf %132, %122 : vector<1x8x128xf32>
    %134 = vector.broadcast %cst_61 : f32 to vector<1x8x128xf32>
    %135 = arith.minimumf %134, %133 : vector<1x8x128xf32>
    %cst_62 = arith.constant 1.000000e+00 : f32
    %136 = vector.broadcast %cst_62 : f32 to vector<1x8x128xf32>
    %137 = arith.subf %136, %135 : vector<1x8x128xf32>
    %138 = arith.mulf %131, %137 : vector<1x8x128xf32>
    %139 = arith.subf %21, %31 : vector<4x8x128xf32>
    %140 = arith.mulf %139, %139 : vector<4x8x128xf32>
    %cst_63 = arith.constant dense<0.000000e+00> : vector<8x128xf32>
    %141 = vector.multi_reduction <add>, %140, %cst_63 [0] : vector<4x8x128xf32> to vector<8x128xf32>
    %142 = vector.shape_cast %141 : vector<8x128xf32> to vector<1x8x128xf32>
    %143 = arith.subf %23, %33 : vector<1x8x128xf32>
    %144 = arith.mulf %143, %143 : vector<1x8x128xf32>
    %145 = arith.addf %138, %142 : vector<1x8x128xf32>
    %146 = arith.addf %145, %144 : vector<1x8x128xf32>
    %cst_64 = arith.constant 0.000000e+00 : f32
    %147 = vector.broadcast %cst_64 : f32 to vector<1x8x128xf32>
    %148 = arith.subf %147, %146 : vector<1x8x128xf32>
    %149 = math.exp %148 : vector<1x8x128xf32>
    %150 = arith.negf %17 : vector<4x8x128xf32>
    %151 = math.exp %150 : vector<4x8x128xf32>
    %cst_65 = arith.constant 1.000000e+00 : f32
    %152 = vector.broadcast %cst_65 : f32 to vector<4x8x128xf32>
    %153 = arith.addf %152, %151 : vector<4x8x128xf32>
    %154 = arith.divf %152, %153 : vector<4x8x128xf32>
    %155 = vector.broadcast %149 : vector<1x8x128xf32> to vector<4x8x128xf32>
    %156 = arith.mulf %154, %155 : vector<4x8x128xf32>
    %cst_66 = arith.constant 1.000000e+00 : f32
    %157 = vector.broadcast %cst_66 : f32 to vector<4x8x128xf32>
    %158 = arith.subf %157, %156 : vector<4x8x128xf32>
    %cst_67 = arith.constant 1.000000e-16 : f32
    %159 = vector.broadcast %cst_67 : f32 to vector<4x8x128xf32>
    %160 = arith.addf %156, %159 : vector<4x8x128xf32>
    %161 = arith.divf %158, %160 : vector<4x8x128xf32>
    %cst_68 = arith.constant 1.000000e-16 : f32
    %162 = vector.broadcast %cst_68 : f32 to vector<4x8x128xf32>
    %163 = arith.addf %161, %162 : vector<4x8x128xf32>
    %164 = math.log %163 : vector<4x8x128xf32>
    %cst_69 = arith.constant 0.000000e+00 : f32
    %165 = vector.broadcast %cst_69 : f32 to vector<4x8x128xf32>
    %166 = arith.subf %165, %164 : vector<4x8x128xf32>
    %cst_70 = arith.constant 0.000000e+00 : f32
    %167 = vector.broadcast %cst_70 : f32 to vector<1x8x128xf32>
    %168 = arith.maximumf %15, %167 : vector<1x8x128xf32>
    %169 = arith.mulf %15, %49 : vector<1x8x128xf32>
    %170 = arith.subf %168, %169 : vector<1x8x128xf32>
    %171 = math.absf %15 : vector<1x8x128xf32>
    %cst_71 = arith.constant 0.000000e+00 : f32
    %172 = vector.broadcast %cst_71 : f32 to vector<1x8x128xf32>
    %173 = arith.subf %172, %171 : vector<1x8x128xf32>
    %174 = math.exp %173 : vector<1x8x128xf32>
    %175 = math.log1p %174 : vector<1x8x128xf32>
    %176 = arith.addf %170, %175 : vector<1x8x128xf32>
    %177 = arith.negf %15 : vector<1x8x128xf32>
    %178 = math.exp %177 : vector<1x8x128xf32>
    %cst_72 = arith.constant 1.000000e+00 : f32
    %179 = vector.broadcast %cst_72 : f32 to vector<1x8x128xf32>
    %180 = arith.addf %179, %178 : vector<1x8x128xf32>
    %181 = arith.divf %179, %180 : vector<1x8x128xf32>
    %182 = arith.subf %49, %181 : vector<1x8x128xf32>
    %183 = arith.mulf %182, %182 : vector<1x8x128xf32>
    %184 = arith.mulf %176, %183 : vector<1x8x128xf32>
    %cst_73 = arith.constant 0.000000e+00 : f32
    %185 = vector.broadcast %cst_73 : f32 to vector<4x8x128xf32>
    %186 = arith.maximumf %17, %185 : vector<4x8x128xf32>
    %187 = arith.mulf %17, %57 : vector<4x8x128xf32>
    %188 = arith.subf %186, %187 : vector<4x8x128xf32>
    %189 = math.absf %17 : vector<4x8x128xf32>
    %cst_74 = arith.constant 0.000000e+00 : f32
    %190 = vector.broadcast %cst_74 : f32 to vector<4x8x128xf32>
    %191 = arith.subf %190, %189 : vector<4x8x128xf32>
    %192 = math.exp %191 : vector<4x8x128xf32>
    %193 = math.log1p %192 : vector<4x8x128xf32>
    %194 = arith.addf %188, %193 : vector<4x8x128xf32>
    %cst_75 = arith.constant 0.000000e+00 : f32
    %195 = vector.broadcast %cst_75 : f32 to vector<4x8x128xf32>
    %196 = arith.maximumf %166, %195 : vector<4x8x128xf32>
    %197 = arith.mulf %166, %57 : vector<4x8x128xf32>
    %198 = arith.subf %196, %197 : vector<4x8x128xf32>
    %199 = math.absf %166 : vector<4x8x128xf32>
    %cst_76 = arith.constant 0.000000e+00 : f32
    %200 = vector.broadcast %cst_76 : f32 to vector<4x8x128xf32>
    %201 = arith.subf %200, %199 : vector<4x8x128xf32>
    %202 = math.exp %201 : vector<4x8x128xf32>
    %203 = math.log1p %202 : vector<4x8x128xf32>
    %204 = arith.addf %198, %203 : vector<4x8x128xf32>
    %205 = arith.mulf %35, %37 : vector<1x8x128xf32>
    %206 = arith.mulf %205, %58 : vector<1x8x128xf32>
    %207 = arith.mulf %53, %154 : vector<4x8x128xf32>
    %cst_77 = arith.constant dense<0.000000e+00> : vector<8x128xf32>
    %208 = vector.multi_reduction <add>, %207, %cst_77 [0] : vector<4x8x128xf32> to vector<8x128xf32>
    %209 = vector.shape_cast %208 : vector<8x128xf32> to vector<1x8x128xf32>
    %210 = arith.addf %209, %43 : vector<1x8x128xf32>
    %cst_78 = arith.constant 5.000000e-01 : f32
    %211 = vector.broadcast %cst_78 : f32 to vector<1x8x128xf32>
    %212 = arith.mulf %210, %211 : vector<1x8x128xf32>
    %213 = arith.mulf %206, %212 : vector<1x8x128xf32>
    %214 = arith.mulf %35, %184 : vector<1x8x128xf32>
    %215 = arith.mulf %214, %37 : vector<1x8x128xf32>
    %216 = arith.addf %43, %149 : vector<1x8x128xf32>
    %217 = arith.mulf %215, %216 : vector<1x8x128xf32>
    %cst_79 = arith.constant 5.000000e-01 : f32
    %218 = vector.broadcast %cst_79 : f32 to vector<1x8x128xf32>
    %219 = arith.mulf %217, %218 : vector<1x8x128xf32>
    %220 = arith.mulf %45, %184 : vector<1x8x128xf32>
    %221 = arith.mulf %220, %37 : vector<1x8x128xf32>
    %222 = arith.mulf %53, %204 : vector<4x8x128xf32>
    %cst_80 = arith.constant dense<0.000000e+00> : vector<8x128xf32>
    %223 = vector.multi_reduction <add>, %222, %cst_80 [0] : vector<4x8x128xf32> to vector<8x128xf32>
    %224 = vector.shape_cast %223 : vector<8x128xf32> to vector<1x8x128xf32>
    %225 = arith.mulf %224, %206 : vector<1x8x128xf32>
    %cst_81 = arith.constant 1.000000e+00 : f32
    %226 = vector.broadcast %cst_81 : f32 to vector<4x8x128xf32>
    %227 = arith.subf %226, %53 : vector<4x8x128xf32>
    %228 = arith.mulf %227, %194 : vector<4x8x128xf32>
    %cst_82 = arith.constant dense<0.000000e+00> : vector<8x128xf32>
    %229 = vector.multi_reduction <add>, %228, %cst_82 [0] : vector<4x8x128xf32> to vector<8x128xf32>
    %230 = vector.shape_cast %229 : vector<8x128xf32> to vector<1x8x128xf32>
    %231 = arith.mulf %230, %206 : vector<1x8x128xf32>
    %232 = arith.mulf %213, %138 : vector<1x8x128xf32>
    %cst_83 = arith.constant dense<0.000000e+00> : vector<8x128xf32>
    %233 = vector.multi_reduction <add>, %194, %cst_83 [0] : vector<4x8x128xf32> to vector<8x128xf32>
    %234 = vector.shape_cast %233 : vector<8x128xf32> to vector<1x8x128xf32>
    %235 = arith.mulf %234, %206 : vector<1x8x128xf32>
    %236 = arith.mulf %213, %142 : vector<1x8x128xf32>
    %237 = arith.mulf %213, %144 : vector<1x8x128xf32>
    %238 = vector.broadcast %4 : f32 to vector<4x8x128xf32>
    %239 = arith.mulf %25, %238 : vector<4x8x128xf32>
    %240 = vector.broadcast %4 : f32 to vector<4x8x128xf32>
    %241 = arith.mulf %29, %240 : vector<4x8x128xf32>
    %242 = arith.subf %239, %241 : vector<4x8x128xf32>
    %243 = math.absf %242 : vector<4x8x128xf32>
    %cst_84 = arith.constant 1.000000e+00 : f32
    %244 = vector.broadcast %cst_84 : f32 to vector<4x8x128xf32>
    %245 = arith.cmpf olt, %243, %244 : vector<4x8x128xf32>
    %cst_85 = arith.constant 5.000000e-01 : f32
    %246 = vector.broadcast %cst_85 : f32 to vector<4x8x128xf32>
    %247 = arith.mulf %246, %243 : vector<4x8x128xf32>
    %248 = arith.mulf %247, %243 : vector<4x8x128xf32>
    %cst_86 = arith.constant 5.000000e-01 : f32
    %249 = vector.broadcast %cst_86 : f32 to vector<4x8x128xf32>
    %250 = arith.subf %243, %249 : vector<4x8x128xf32>
    %251 = arith.select %245, %248, %250 : vector<4x8x128xi1>, vector<4x8x128xf32>
    %cst_87 = arith.constant dense<0.000000e+00> : vector<8x128xf32>
    %252 = vector.multi_reduction <add>, %251, %cst_87 [0] : vector<4x8x128xf32> to vector<8x128xf32>
    %253 = vector.shape_cast %252 : vector<8x128xf32> to vector<1x8x128xf32>
    %254 = arith.mulf %213, %131 : vector<1x8x128xf32>
    %255 = arith.mulf %253, %254 : vector<1x8x128xf32>
    %c0_88 = arith.constant 0 : index
    %c0_89 = arith.constant 0 : index
    %c0_90 = arith.constant 0 : index
    %256 = vector.load %arg8[%c0_88, %c0_89, %c0_90] : memref<16x8x128xf32, #tpu.memory_space<vmem>>, vector<1x8x128xf32>
    %257 = vector.shape_cast %256 : vector<1x8x128xf32> to vector<8x128xf32>
    %258 = vector.shape_cast %219 : vector<1x8x128xf32> to vector<8x128xf32>
    %259 = arith.addf %257, %258 : vector<8x128xf32>
    %c0_91 = arith.constant 0 : index
    %c0_92 = arith.constant 0 : index
    %c0_93 = arith.constant 0 : index
    %260 = vector.load %arg8[%c0_91, %c0_92, %c0_93] : memref<16x8x128xf32, #tpu.memory_space<vmem>>, vector<1x8x128xf32>
    %261 = vector.shape_cast %260 : vector<1x8x128xf32> to vector<8x128xf32>
    %262 = vector.shape_cast %259 : vector<8x128xf32> to vector<1x8x128xf32>
    tpu.vector_store %arg8[%c0_91, %c0_92, %c0_93], %262 {strides = array<i32>} : memref<16x8x128xf32, #tpu.memory_space<vmem>>, vector<1x8x128xf32>,
    %c1_94 = arith.constant 1 : index
    %c0_95 = arith.constant 0 : index
    %c0_96 = arith.constant 0 : index
    %263 = vector.load %arg8[%c1_94, %c0_95, %c0_96] : memref<16x8x128xf32, #tpu.memory_space<vmem>>, vector<1x8x128xf32>
    %264 = vector.shape_cast %263 : vector<1x8x128xf32> to vector<8x128xf32>
    %265 = vector.shape_cast %221 : vector<1x8x128xf32> to vector<8x128xf32>
    %266 = arith.addf %264, %265 : vector<8x128xf32>
    %c1_97 = arith.constant 1 : index
    %c0_98 = arith.constant 0 : index
    %c0_99 = arith.constant 0 : index
    %267 = vector.load %arg8[%c1_97, %c0_98, %c0_99] : memref<16x8x128xf32, #tpu.memory_space<vmem>>, vector<1x8x128xf32>
    %268 = vector.shape_cast %267 : vector<1x8x128xf32> to vector<8x128xf32>
    %269 = vector.shape_cast %266 : vector<8x128xf32> to vector<1x8x128xf32>
    tpu.vector_store %arg8[%c1_97, %c0_98, %c0_99], %269 {strides = array<i32>} : memref<16x8x128xf32, #tpu.memory_space<vmem>>, vector<1x8x128xf32>,
    %c2 = arith.constant 2 : index
    %c0_100 = arith.constant 0 : index
    %c0_101 = arith.constant 0 : index
    %270 = vector.load %arg8[%c2, %c0_100, %c0_101] : memref<16x8x128xf32, #tpu.memory_space<vmem>>, vector<1x8x128xf32>
    %271 = vector.shape_cast %270 : vector<1x8x128xf32> to vector<8x128xf32>
    %272 = vector.shape_cast %225 : vector<1x8x128xf32> to vector<8x128xf32>
    %273 = arith.addf %271, %272 : vector<8x128xf32>
    %c2_102 = arith.constant 2 : index
    %c0_103 = arith.constant 0 : index
    %c0_104 = arith.constant 0 : index
    %274 = vector.load %arg8[%c2_102, %c0_103, %c0_104] : memref<16x8x128xf32, #tpu.memory_space<vmem>>, vector<1x8x128xf32>
    %275 = vector.shape_cast %274 : vector<1x8x128xf32> to vector<8x128xf32>
    %276 = vector.shape_cast %273 : vector<8x128xf32> to vector<1x8x128xf32>
    tpu.vector_store %arg8[%c2_102, %c0_103, %c0_104], %276 {strides = array<i32>} : memref<16x8x128xf32, #tpu.memory_space<vmem>>, vector<1x8x128xf32>,
    %c3 = arith.constant 3 : index
    %c0_105 = arith.constant 0 : index
    %c0_106 = arith.constant 0 : index
    %277 = vector.load %arg8[%c3, %c0_105, %c0_106] : memref<16x8x128xf32, #tpu.memory_space<vmem>>, vector<1x8x128xf32>
    %278 = vector.shape_cast %277 : vector<1x8x128xf32> to vector<8x128xf32>
    %279 = vector.shape_cast %231 : vector<1x8x128xf32> to vector<8x128xf32>
    %280 = arith.addf %278, %279 : vector<8x128xf32>
    %c3_107 = arith.constant 3 : index
    %c0_108 = arith.constant 0 : index
    %c0_109 = arith.constant 0 : index
    %281 = vector.load %arg8[%c3_107, %c0_108, %c0_109] : memref<16x8x128xf32, #tpu.memory_space<vmem>>, vector<1x8x128xf32>
    %282 = vector.shape_cast %281 : vector<1x8x128xf32> to vector<8x128xf32>
    %283 = vector.shape_cast %280 : vector<8x128xf32> to vector<1x8x128xf32>
    tpu.vector_store %arg8[%c3_107, %c0_108, %c0_109], %283 {strides = array<i32>} : memref<16x8x128xf32, #tpu.memory_space<vmem>>, vector<1x8x128xf32>,
    %c4 = arith.constant 4 : index
    %c0_110 = arith.constant 0 : index
    %c0_111 = arith.constant 0 : index
    %284 = vector.load %arg8[%c4, %c0_110, %c0_111] : memref<16x8x128xf32, #tpu.memory_space<vmem>>, vector<1x8x128xf32>
    %285 = vector.shape_cast %284 : vector<1x8x128xf32> to vector<8x128xf32>
    %286 = vector.shape_cast %232 : vector<1x8x128xf32> to vector<8x128xf32>
    %287 = arith.addf %285, %286 : vector<8x128xf32>
    %c4_112 = arith.constant 4 : index
    %c0_113 = arith.constant 0 : index
    %c0_114 = arith.constant 0 : index
    %288 = vector.load %arg8[%c4_112, %c0_113, %c0_114] : memref<16x8x128xf32, #tpu.memory_space<vmem>>, vector<1x8x128xf32>
    %289 = vector.shape_cast %288 : vector<1x8x128xf32> to vector<8x128xf32>
    %290 = vector.shape_cast %287 : vector<8x128xf32> to vector<1x8x128xf32>
    tpu.vector_store %arg8[%c4_112, %c0_113, %c0_114], %290 {strides = array<i32>} : memref<16x8x128xf32, #tpu.memory_space<vmem>>, vector<1x8x128xf32>,
    %c5_115 = arith.constant 5 : index
    %c0_116 = arith.constant 0 : index
    %c0_117 = arith.constant 0 : index
    %291 = vector.load %arg8[%c5_115, %c0_116, %c0_117] : memref<16x8x128xf32, #tpu.memory_space<vmem>>, vector<1x8x128xf32>
    %292 = vector.shape_cast %291 : vector<1x8x128xf32> to vector<8x128xf32>
    %293 = vector.shape_cast %235 : vector<1x8x128xf32> to vector<8x128xf32>
    %294 = arith.addf %292, %293 : vector<8x128xf32>
    %c5_118 = arith.constant 5 : index
    %c0_119 = arith.constant 0 : index
    %c0_120 = arith.constant 0 : index
    %295 = vector.load %arg8[%c5_118, %c0_119, %c0_120] : memref<16x8x128xf32, #tpu.memory_space<vmem>>, vector<1x8x128xf32>
    %296 = vector.shape_cast %295 : vector<1x8x128xf32> to vector<8x128xf32>
    %297 = vector.shape_cast %294 : vector<8x128xf32> to vector<1x8x128xf32>
    tpu.vector_store %arg8[%c5_118, %c0_119, %c0_120], %297 {strides = array<i32>} : memref<16x8x128xf32, #tpu.memory_space<vmem>>, vector<1x8x128xf32>,
    %c6 = arith.constant 6 : index
    %c0_121 = arith.constant 0 : index
    %c0_122 = arith.constant 0 : index
    %298 = vector.load %arg8[%c6, %c0_121, %c0_122] : memref<16x8x128xf32, #tpu.memory_space<vmem>>, vector<1x8x128xf32>
    %299 = vector.shape_cast %298 : vector<1x8x128xf32> to vector<8x128xf32>
    %300 = vector.shape_cast %236 : vector<1x8x128xf32> to vector<8x128xf32>
    %301 = arith.addf %299, %300 : vector<8x128xf32>
    %c6_123 = arith.constant 6 : index
    %c0_124 = arith.constant 0 : index
    %c0_125 = arith.constant 0 : index
    %302 = vector.load %arg8[%c6_123, %c0_124, %c0_125] : memref<16x8x128xf32, #tpu.memory_space<vmem>>, vector<1x8x128xf32>
    %303 = vector.shape_cast %302 : vector<1x8x128xf32> to vector<8x128xf32>
    %304 = vector.shape_cast %301 : vector<8x128xf32> to vector<1x8x128xf32>
    tpu.vector_store %arg8[%c6_123, %c0_124, %c0_125], %304 {strides = array<i32>} : memref<16x8x128xf32, #tpu.memory_space<vmem>>, vector<1x8x128xf32>,
    %c7 = arith.constant 7 : index
    %c0_126 = arith.constant 0 : index
    %c0_127 = arith.constant 0 : index
    %305 = vector.load %arg8[%c7, %c0_126, %c0_127] : memref<16x8x128xf32, #tpu.memory_space<vmem>>, vector<1x8x128xf32>
    %306 = vector.shape_cast %305 : vector<1x8x128xf32> to vector<8x128xf32>
    %307 = vector.shape_cast %237 : vector<1x8x128xf32> to vector<8x128xf32>
    %308 = arith.addf %306, %307 : vector<8x128xf32>
    %c7_128 = arith.constant 7 : index
    %c0_129 = arith.constant 0 : index
    %c0_130 = arith.constant 0 : index
    %309 = vector.load %arg8[%c7_128, %c0_129, %c0_130] : memref<16x8x128xf32, #tpu.memory_space<vmem>>, vector<1x8x128xf32>
    %310 = vector.shape_cast %309 : vector<1x8x128xf32> to vector<8x128xf32>
    %311 = vector.shape_cast %308 : vector<8x128xf32> to vector<1x8x128xf32>
    tpu.vector_store %arg8[%c7_128, %c0_129, %c0_130], %311 {strides = array<i32>} : memref<16x8x128xf32, #tpu.memory_space<vmem>>, vector<1x8x128xf32>,
    %c8 = arith.constant 8 : index
    %c0_131 = arith.constant 0 : index
    %c0_132 = arith.constant 0 : index
    %312 = vector.load %arg8[%c8, %c0_131, %c0_132] : memref<16x8x128xf32, #tpu.memory_space<vmem>>, vector<1x8x128xf32>
    %313 = vector.shape_cast %312 : vector<1x8x128xf32> to vector<8x128xf32>
    %314 = vector.shape_cast %255 : vector<1x8x128xf32> to vector<8x128xf32>
    %315 = arith.addf %313, %314 : vector<8x128xf32>
    %c8_133 = arith.constant 8 : index
    %c0_134 = arith.constant 0 : index
    %c0_135 = arith.constant 0 : index
    %316 = vector.load %arg8[%c8_133, %c0_134, %c0_135] : memref<16x8x128xf32, #tpu.memory_space<vmem>>, vector<1x8x128xf32>
    %317 = vector.shape_cast %316 : vector<1x8x128xf32> to vector<8x128xf32>
    %318 = vector.shape_cast %315 : vector<8x128xf32> to vector<1x8x128xf32>
    tpu.vector_store %arg8[%c8_133, %c0_134, %c0_135], %318 {strides = array<i32>} : memref<16x8x128xf32, #tpu.memory_space<vmem>>, vector<1x8x128xf32>,
    %c9_136 = arith.constant 9 : index
    %c0_137 = arith.constant 0 : index
    %c0_138 = arith.constant 0 : index
    %319 = vector.load %arg8[%c9_136, %c0_137, %c0_138] : memref<16x8x128xf32, #tpu.memory_space<vmem>>, vector<1x8x128xf32>
    %320 = vector.shape_cast %319 : vector<1x8x128xf32> to vector<8x128xf32>
    %321 = vector.shape_cast %35 : vector<1x8x128xf32> to vector<8x128xf32>
    %322 = arith.addf %320, %321 : vector<8x128xf32>
    %c9_139 = arith.constant 9 : index
    %c0_140 = arith.constant 0 : index
    %c0_141 = arith.constant 0 : index
    %323 = vector.load %arg8[%c9_139, %c0_140, %c0_141] : memref<16x8x128xf32, #tpu.memory_space<vmem>>, vector<1x8x128xf32>
    %324 = vector.shape_cast %323 : vector<1x8x128xf32> to vector<8x128xf32>
    %325 = vector.shape_cast %322 : vector<8x128xf32> to vector<1x8x128xf32>
    tpu.vector_store %arg8[%c9_139, %c0_140, %c0_141], %325 {strides = array<i32>} : memref<16x8x128xf32, #tpu.memory_space<vmem>>, vector<1x8x128xf32>,
    %326 = arith.index_cast %arg1 : i32 to index
    %327 = memref.load %arg4[%326] : memref<3xi32, #tpu.memory_space<smem>>
    %c1_i32_142 = arith.constant 1 : i32
    %328 = arith.cmpi eq, %327, %c1_i32_142 : i32
    %329 = arith.extui %328 : i1 to i32
    %c0_i32_143 = arith.constant 0 : i32
    %330 = arith.cmpi ne, %329, %c0_i32_143 : i32
    scf.if %330 {
      %c0_144 = arith.constant 0 : index
      %c0_145 = arith.constant 0 : index
      %c0_146 = arith.constant 0 : index
      %331 = vector.load %arg8[%c0_144, %c0_145, %c0_146] : memref<16x8x128xf32, #tpu.memory_space<vmem>>, vector<16x8x128xf32>
      %cst_147 = arith.constant dense<0.000000e+00> : vector<16x128xf32>
      %332 = vector.multi_reduction <add>, %331, %cst_147 [1] : vector<16x8x128xf32> to vector<16x128xf32>
      %c0_148 = arith.constant 0 : index
      %c0_149 = arith.constant 0 : index
      %c0_150 = arith.constant 0 : index
      %c0_151 = arith.constant 0 : index
      %333 = vector.load %arg7[%c0_148, %c0_149, %c0_150, %c0_151] : memref<1x1x16x128xf32, #tpu.memory_space<vmem>>, vector<1x1x16x128xf32>
      %334 = vector.shape_cast %333 : vector<1x1x16x128xf32> to vector<16x128xf32>
      %335 = vector.shape_cast %332 : vector<16x128xf32> to vector<1x1x16x128xf32>
      tpu.vector_store %arg7[%c0_148, %c0_149, %c0_150, %c0_151], %335 {strides = array<i32>} : memref<1x1x16x128xf32, #tpu.memory_space<vmem>>, vector<1x1x16x128xf32>,
    } else {
    }
    return
  }
  func.func @transform_0(%arg0: i32, %arg1: i32, %arg2: memref<3xi32, #tpu.memory_space<smem>>, %arg3: memref<3xi32, #tpu.memory_space<smem>>, %arg4: memref<3xi32, #tpu.memory_space<smem>>, %arg5: memref<6xf32, #tpu.memory_space<smem>>) -> (i32, i32, i32, i32) {
    %c0_i32 = arith.constant 0 : i32
    %c0_i32_0 = arith.constant 0 : i32
    %c0_i32_1 = arith.constant 0 : i32
    return %arg0, %c0_i32, %arg1, %c0_i32_0 : i32, i32, i32, i32
  }
  func.func @transform_1(%arg0: i32, %arg1: i32, %arg2: memref<3xi32, #tpu.memory_space<smem>>, %arg3: memref<3xi32, #tpu.memory_space<smem>>, %arg4: memref<3xi32, #tpu.memory_space<smem>>, %arg5: memref<6xf32, #tpu.memory_space<smem>>) -> (i32, i32, i32, i32) {
    %0 = arith.index_cast %arg1 : i32 to index
    %1 = memref.load %arg2[%0] : memref<3xi32, #tpu.memory_space<smem>>
    %c0_i32 = arith.constant 0 : i32
    %c0_i32_0 = arith.constant 0 : i32
    %c0_i32_1 = arith.constant 0 : i32
    return %arg0, %1, %c0_i32, %c0_i32_0 : i32, i32, i32, i32
  }
}

</mosaic_0001>

<bundles_post_ra>
// kernel: loss_forward.1
= control target key start
LH: loop header
LB: loop body
LE: loop exit
PB: predicated region body
PF: predicated region fallthrough
CT: control target
= control target key end

     0   :  { %s2033_s0 = inlined_call_operand.vmem [shape: s32[3], index: 0, kind: input, shape index: {}]   ;;  %s2034_s4 = inlined_call_operand.vmem [shape: f32[2,38,24,128], index: 4, kind: input, shape index: {}]   ;;  %s2035_s5 = inlined_call_operand.vmem [shape: f32[2,3,16,128], index: 5, kind: output, shape index: {}]   ;;  %s2036_s1 = inlined_call_operand.vmem [shape: s32[3], index: 1, kind: input, shape index: {}, may-alias: {1,2}]   ;;  %s2037_s2 = inlined_call_operand.vmem [shape: s32[3], index: 2, kind: input, shape index: {}, may-alias: {1,2}]   ;;  %s2038_s3 = inlined_call_operand.vmem [shape: f32[6], index: 3, kind: input, shape index: {}]  }
   0x1   :  { %s10_s20 = sshll.u32 %s2033_s0, 4  ;;  %s14_s23 = sshll.u32 %s2036_s1, 4  ;;  %s11_s20 = int_to_ptr.vmem [resolvable:$true] %s10_s20  ;;  %s15_s23 = int_to_ptr.vmem [resolvable:$true] %s14_s23 }
   0x2   :  { %s1349_s24 = scalar_lea.vmem %s11_s20, 16  ;;  %p1354_p1 = scmp.lt.s32.totalorder %s11_s20, %s11_s20 }
   0x3   :  { %p1350_p0 = scmp.ne.s32.totalorder %s11_s20, %s1349_s24  ;;  %p1355_p2 = scmp.lt.s32.totalorder %s1349_s24, %s1349_s24 }
   0x5   :  { %p1356_p3 = por %p1355_p2, %p1354_p1 }
   0x7   :  { %p1357_p4 = pnand %p1356_p3, %p1350_p0 }
   0x9   :  { %1360 = shalt.err (!%p1357_p4)  }
   0xa   :  { %s1455_s25 = smov [#allocation4]   ;;  %s1361_s26 = scalar_lea.vmem %s15_s23, 16 }
   0xb   :  { %13 = dma.vmem_to_smem %s11_s20, 16, %s1455_s25, [#allocation3] }
   0xc   :  { %p1362_p5 = scmp.ne.s32.totalorder %s15_s23, %s1361_s26  ;;  %p1366_p6 = scmp.lt.s32.totalorder %s15_s23, %s15_s23 }
   0xd   :  { %p1367_p7 = scmp.lt.s32.totalorder %s1361_s26, %s1361_s26 }
   0xf   :  { %p1368_p8 = por %p1367_p7, %p1366_p6 }
  0x11   :  { %p1369_p9 = pnand %p1368_p8, %p1362_p5 }
  0x13   :  { %1372 = shalt.err (!%p1369_p9)  }
  0x14   :  { %s1456_s0 = smov [#allocation5]   ;;  %s18_s28 = sshll.u32 %s2037_s2, 4  ;;  %s19_s28 = int_to_ptr.vmem [resolvable:$true] %s18_s28 }
  0x15   :  { %17 = dma.vmem_to_smem %s15_s23, 16, %s1456_s0, [#allocation3] }
  0x16   :  { %s22_s6 = sshll.u32 %s2038_s3, 4  ;;  %s1373_s7 = scalar_lea.vmem %s19_s28, 16  ;;  %s23_s6 = int_to_ptr.vmem [resolvable:$true] %s22_s6 }
  0x17   :  { %p1374_p10 = scmp.ne.s32.totalorder %s19_s28, %s1373_s7  ;;  %p1378_p11 = scmp.lt.s32.totalorder %s19_s28, %s19_s28 }
  0x18   :  { %p1379_p12 = scmp.lt.s32.totalorder %s1373_s7, %s1373_s7 }
  0x1a   :  { %p1380_p13 = por %p1379_p12, %p1378_p11 }
  0x1c   :  { %p1381_p0 = pnand %p1380_p13, %p1374_p10 }
  0x1e   :  { %1384 = shalt.err (!%p1381_p0)  }
  0x1f   :  { %s1457_s8 = smov [#allocation6]   ;;  %s1385_s9 = scalar_lea.vmem %s23_s6, 16 }
  0x20   :  { %21 = dma.vmem_to_smem %s19_s28, 16, %s1457_s8, [#allocation3] }
  0x21   :  { %p1386_p1 = scmp.ne.s32.totalorder %s23_s6, %s1385_s9  ;;  %p1390_p2 = scmp.lt.s32.totalorder %s23_s6, %s23_s6 }
  0x22   :  { %p1391_p3 = scmp.lt.s32.totalorder %s1385_s9, %s1385_s9 }
  0x24   :  { %p1392_p4 = por %p1391_p3, %p1390_p2 }
  0x26   :  { %p1393_p5 = pnand %p1392_p4, %p1386_p1 }
  0x28   :  { %1396 = shalt.err (!%p1393_p5)  }
  0x29   :  { %s1458_s2 = smov [#allocation7]  }
  0x2a   :  { %25 = dma.vmem_to_smem %s23_s6, 16, %s1458_s2, [#allocation3] }
  0x2b   :  { %1425 = dma.done.wait [#allocation3], 64 }
  0x2c   :  { %1426 = vsyncadd [#allocation3], 4294967232 }
  0x2d   :  { %27 = sfence }
  0x2e   :  { %s1503_s3 = smov 0   ;;  %s1505_s10 = smov 0  }
  0x2f   :  { %s1507_s11 = smov 0   ;;  %s1509_s12 = smov 0  }
  0x30   :  { %s1511_s13 = smov 0   ;;  %s1513_s14 = smov 0  }
  0x31   :  { %s1515_s15 = smov 0  }
  0x32 LB: > { %s42_s16 = sadd.s32 1, %s1445_s13  ;;  %s45_s17 = sadd.s32 1, %s1449_s14  ;;  %s1453_s15 = sphi %s1515_s15, %s33_s15   ;;  %s1449_s14 = sphi %s1513_s14, %s2066_s14   ;;  %s1445_s13 = sphi %s1511_s13, %s2065_s13   ;;  %s1441_s12 = sphi %s1509_s12, %s2064_s12   ;;  %s1437_s11 = sphi %s1507_s11, %s2063_s11   ;;  %s1433_s10 = sphi %s1505_s10, %s2062_s10   ;;  %s1429_s3 = sphi %s1503_s3, %s2061_s3  }
  0x33   : > { %p43_p6 = scmp.ge.s32.totalorder %s42_s16, 3  ;;  %p61_p7 = scmp.ne.s32.totalorder %s1433_s10, %s1429_s3 }
  0x34   : > { %p62_p8 = scmp.eq.s32.totalorder %s1453_s15, 0  ;;  %s54_s21 = sadd.s32 1, %s1433_s10 }
  0x35   : > { %s2068_s16 = smov (%p43_p6, %s42_s16), 0  ;;  %s2070_s17 = smov (!%p43_p6, %s45_s17), %s1449_s14 }
  0x36   : > { %p63_p9 = por %p62_p8, %p61_p7  ;;  %p47_p10 = scmp.ge.s32.totalorder %s2070_s17, 2 }
  0x37   : > { %s50_s18 = ssub.s32 %s1445_s13, %s2068_s16  ;;  %p1145_p12 = scmp.ge.s32.totalorder %s1453_s15, 6 }
  0x38   : > { %s2072_s17 = smov (%p47_p10, %s2070_s17), 0 }
  0x39   : > { %s49_s19 = ssub.s32 %s1449_s14, %s2072_s17  ;;  %117 = sbr.rel (%p1145_p12) target bundleno = 88 (0x58), region = 16 }
  0x3a   : > { %s51_s20 = sor.u32 %s50_s18, %s49_s19 }
  0x3b   : > { %p52_p11 = scmp.eq.s32.totalorder %s51_s20, 0 }
  0x3d   : > { %s1554_s22 = scalar_select %p52_p11, %s1433_s10, %s54_s21  }
  0x3e   : > { %120 = sbr.rel (!%p63_p9) target bundleno = 88 (0x58), region = 20  ;;  %s122_s23 = sand.u32 (%p63_p9), 1, %s1433_s10  }
  0x3f   : > { %s1206_s24 = smul.u32 (%p63_p9), 114, %s1449_s14 }
  0x40   : > { %s1205_s25 = smul.u32 (%p63_p9), 304, %s122_s23 }
  0x41   : > { %s126_s26 = sadd.s32 (%p63_p9), %s1445_s13, %s1206_s24 }
  0x42   : > { %s1146_s0 = sshll.u32 (%p63_p9), %s126_s26, 3  ;;  %s1568_s29 = scalar_lea.vmem (%p63_p9), [#allocation8], %s1205_s25 }
  0x43   : > { %s1563_s28 = scalar_lea.vmem %s2034_s4, %s1146_s0 }
  0x44   : > { %v231_v0 = vld [vmem:[%s1563_s28] sm:$0xff]  ;;  %v233_v1 = vld [vmem:[%s1563_s28 + $0x18] sm:$0xff]  ;;  %v235_v2 = vld [vmem:[%s1563_s28 + $0x30] sm:$0xff] }
  0x45   : > { %232 = vst [vmem:[%s1568_s29] sm:$0xff] %v231_v0  ;;  %234 = vst [vmem:[%s1568_s29 + $0x8] sm:$0xff] %v233_v1  ;;  %v237_v3 = vld [vmem:[%s1563_s28 + $0x48] sm:$0xff]  ;;  %v239_v4 = vld [vmem:[%s1563_s28 + $0x60] sm:$0xff] }
  0x46   : > { %236 = vst [vmem:[%s1568_s29 + $0x10] sm:$0xff] %v235_v2  ;;  %v241_v5 = vld [vmem:[%s1563_s28 + $0x78] sm:$0xff]  ;;  %238 = vst [vmem:[%s1568_s29 + $0x18] sm:$0xff] %v237_v3  ;;  %v243_v6 = vld [vmem:[%s1563_s28 + $0x90] sm:$0xff] }
  0x47   : > { %240 = vst [vmem:[%s1568_s29 + $0x20] sm:$0xff] %v239_v4  ;;  %242 = vst [vmem:[%s1568_s29 + $0x28] sm:$0xff] %v241_v5  ;;  %v245_v7 = vld [vmem:[%s1563_s28 + $0xa8] sm:$0xff]  ;;  %v247_v8 = vld [vmem:[%s1563_s28 + $0xc0] sm:$0xff] }
  0x48   : > { %244 = vst [vmem:[%s1568_s29 + $0x30] sm:$0xff] %v243_v6  ;;  %246 = vst [vmem:[%s1568_s29 + $0x38] sm:$0xff] %v245_v7  ;;  %v249_v9 = vld [vmem:[%s1563_s28 + $0xd8] sm:$0xff]  ;;  %v251_v10 = vld [vmem:[%s1563_s28 + $0xf0] sm:$0xff] }
  0x49   : > { %248 = vst [vmem:[%s1568_s29 + $0x40] sm:$0xff] %v247_v8  ;;  %v253_v11 = vld [vmem:[%s1563_s28 + $0x108] sm:$0xff]  ;;  %250 = vst [vmem:[%s1568_s29 + $0x48] sm:$0xff] %v249_v9  ;;  %v255_v12 = vld [vmem:[%s1563_s28 + $0x120] sm:$0xff] }
  0x4a   : > { %252 = vst [vmem:[%s1568_s29 + $0x50] sm:$0xff] %v251_v10  ;;  %254 = vst [vmem:[%s1568_s29 + $0x58] sm:$0xff] %v253_v11  ;;  %v257_v13 = vld [vmem:[%s1563_s28 + $0x138] sm:$0xff]  ;;  %v259_v14 = vld [vmem:[%s1563_s28 + $0x150] sm:$0xff] }
  0x4b   : > { %256 = vst [vmem:[%s1568_s29 + $0x60] sm:$0xff] %v255_v12  ;;  %258 = vst [vmem:[%s1568_s29 + $0x68] sm:$0xff] %v257_v13  ;;  %v261_v15 = vld [vmem:[%s1563_s28 + $0x168] sm:$0xff]  ;;  %v263_v16 = vld [vmem:[%s1563_s28 + $0x180] sm:$0xff] }
  0x4c   : > { %260 = vst [vmem:[%s1568_s29 + $0x70] sm:$0xff] %v259_v14  ;;  %v265_v17 = vld [vmem:[%s1563_s28 + $0x198] sm:$0xff]  ;;  %262 = vst [vmem:[%s1568_s29 + $0x78] sm:$0xff] %v261_v15  ;;  %v267_v18 = vld [vmem:[%s1563_s28 + $0x1b0] sm:$0xff] }
  0x4d   : > { %264 = vst [vmem:[%s1568_s29 + $0x80] sm:$0xff] %v263_v16  ;;  %266 = vst [vmem:[%s1568_s29 + $0x88] sm:$0xff] %v265_v17  ;;  %v269_v19 = vld [vmem:[%s1563_s28 + $0x1c8] sm:$0xff]  ;;  %v271_v20 = vld [vmem:[%s1563_s28 + $0x1e0] sm:$0xff] }
  0x4e   : > { %268 = vst [vmem:[%s1568_s29 + $0x90] sm:$0xff] %v267_v18  ;;  %270 = vst [vmem:[%s1568_s29 + $0x98] sm:$0xff] %v269_v19  ;;  %v273_v21 = vld [vmem:[%s1563_s28 + $0x1f8] sm:$0xff]  ;;  %v275_v22 = vld [vmem:[%s1563_s28 + $0x210] sm:$0xff] }
  0x4f   : > { %272 = vst [vmem:[%s1568_s29 + $0xa0] sm:$0xff] %v271_v20  ;;  %v277_v23 = vld [vmem:[%s1563_s28 + $0x228] sm:$0xff]  ;;  %274 = vst [vmem:[%s1568_s29 + $0xa8] sm:$0xff] %v273_v21  ;;  %v279_v24 = vld [vmem:[%s1563_s28 + $0x240] sm:$0xff] }
  0x50   : > { %276 = vst [vmem:[%s1568_s29 + $0xb0] sm:$0xff] %v275_v22  ;;  %278 = vst [vmem:[%s1568_s29 + $0xb8] sm:$0xff] %v277_v23  ;;  %v281_v25 = vld [vmem:[%s1563_s28 + $0x258] sm:$0xff]  ;;  %v283_v26 = vld [vmem:[%s1563_s28 + $0x270] sm:$0xff] }
  0x51   : > { %280 = vst [vmem:[%s1568_s29 + $0xc0] sm:$0xff] %v279_v24  ;;  %282 = vst [vmem:[%s1568_s29 + $0xc8] sm:$0xff] %v281_v25  ;;  %v285_v27 = vld [vmem:[%s1563_s28 + $0x288] sm:$0xff]  ;;  %v287_v28 = vld [vmem:[%s1563_s28 + $0x2a0] sm:$0xff] }
  0x52   : > { %284 = vst [vmem:[%s1568_s29 + $0xd0] sm:$0xff] %v283_v26  ;;  %v289_v29 = vld [vmem:[%s1563_s28 + $0x2b8] sm:$0xff]  ;;  %286 = vst [vmem:[%s1568_s29 + $0xd8] sm:$0xff] %v285_v27  ;;  %v291_v30 = vld [vmem:[%s1563_s28 + $0x2d0] sm:$0xff] }
  0x53   : > { %288 = vst [vmem:[%s1568_s29 + $0xe0] sm:$0xff] %v287_v28  ;;  %290 = vst [vmem:[%s1568_s29 + $0xe8] sm:$0xff] %v289_v29  ;;  %v293_v31 = vld [vmem:[%s1563_s28 + $0x2e8] sm:$0xff]  ;;  %v295_v32 = vld [vmem:[%s1563_s28 + $0x300] sm:$0xff] }
  0x54   : > { %292 = vst [vmem:[%s1568_s29 + $0xf0] sm:$0xff] %v291_v30  ;;  %294 = vst [vmem:[%s1568_s29 + $0xf8] sm:$0xff] %v293_v31  ;;  %v297_v33 = vld [vmem:[%s1563_s28 + $0x318] sm:$0xff]  ;;  %v299_v34 = vld [vmem:[%s1563_s28 + $0x330] sm:$0xff] }
  0x55   : > { %296 = vst [vmem:[%s1568_s29 + $0x100] sm:$0xff] %v295_v32  ;;  %v301_v35 = vld [vmem:[%s1563_s28 + $0x348] sm:$0xff]  ;;  %298 = vst [vmem:[%s1568_s29 + $0x108] sm:$0xff] %v297_v33  ;;  %v303_v36 = vld [vmem:[%s1563_s28 + $0x360] sm:$0xff] }
  0x56   : > { %300 = vst [vmem:[%s1568_s29 + $0x110] sm:$0xff] %v299_v34  ;;  %302 = vst [vmem:[%s1568_s29 + $0x118] sm:$0xff] %v301_v35  ;;  %v305_v37 = vld [vmem:[%s1563_s28 + $0x378] sm:$0xff] }
  0x57   : > { %304 = vst [vmem:[%s1568_s29 + $0x120] sm:$0xff] %v303_v36  ;;  %306 = vst [vmem:[%s1568_s29 + $0x128] sm:$0xff] %v305_v37 }
  0x58 PF: > { %p1147_p13 = scmp.ge.s32.totalorder %s1453_s15, 1  ;;  %p311_p0 = scmp.lt.s32.totalorder %s1453_s15, 7 }
  0x5a   : > { %p312_p1 = pnand %p1147_p13, %p311_p0 }
  0x5b   : > { %s318_s30 = sand.u32 (!%p312_p1), 1, %s1429_s3   ;;  %s342_s6 = sld [smem:[#allocation4 + %s1437_s11]] (!%p312_p1) }
  0x5c   : > { %315 = sbr.rel (%p312_p1) target bundleno = 323 (0x143), region = 58  ;;  %p343_p2 = scmp.lt.s32.totalorder (!%p312_p1), %s1441_s12, 1 }
  0x5d   : > { %s1207_s7 = smul.u32 (!%p312_p1), 304, %s318_s30  ;;  %s353_s8 = sld [smem:[#allocation4 + %s1437_s11]] (!%p312_p1) }
  0x5e   : > { %s358_s9 = sld [smem:[#allocation5 + %s1437_s11]] (!%p312_p1) }
  0x5f   : > { %s1660_s1 = scalar_lea.vmem (!%p312_p1), [#allocation8], %s1207_s7 }
  0x61   : > { %s2074_s12 = smov (!%p343_p2, %s1441_s12), 1  ;;  %p345_p3 = scmp.lt.s32.totalorder %s342_s6, 2 }
  0x62   : > { %s1208_s2 = smul.u32 6, %s2074_s12 }
  0x63   : > { %s2076_s6 = smov (!%p345_p3, %s342_s6), 2  ;;  %s1150_s18 = sshll.u32 %s353_s8, 1 }
  0x64   : > { %s1148_s19 = sshll.u32 %s2076_s6, 1  ;;  %s1651_s20 = sld [smem:[#allocation7 + %s1150_s18]] }
  0x65   : > { %s349_s21 = sadd.s32 %s1208_s2, %s1148_s19  ;;  %s356_s23 = sadd.s32 1, %s1150_s18 }
  0x66   : > { %s1149_s24 = sshll.u32 %s349_s21, 3  ;;  %s1653_s25 = sld [smem:[#allocation7 + %s356_s23]] }
  0x67   : > { %s1658_s0 = scalar_lea.vmem %s2035_s5, %s1149_s24  ;;  %p1151_p4 = scmp.ne.s32.totalorder %s358_s9, 1 }
  0x69   : > { %362 = sbr.rel (%p1151_p4) target bundleno = 119 (0x77), region = 66 }
  0x6e   : > { %v1459_v38 = vmov 0.0  }
  0x6f   : > { %363 = vst [vmem:[#allocation2 + $0x30] sm:$0xff] %v1459_v38  ;;  %364 = vst [vmem:[#allocation2] sm:$0xff] %v1459_v38 }
  0x70   : > { %365 = vst [vmem:[#allocation2 + $0x58] sm:$0xff] %v1459_v38  ;;  %366 = vst [vmem:[#allocation2 + $0x18] sm:$0xff] %v1459_v38 }
  0x71   : > { %367 = vst [vmem:[#allocation2 + $0x50] sm:$0xff] %v1459_v38  ;;  %368 = vst [vmem:[#allocation2 + $0x68] sm:$0xff] %v1459_v38 }
  0x72   : > { %369 = vst [vmem:[#allocation2 + $0x8] sm:$0xff] %v1459_v38  ;;  %370 = vst [vmem:[#allocation2 + $0x48] sm:$0xff] %v1459_v38 }
  0x73   : > { %371 = vst [vmem:[#allocation2 + $0x40] sm:$0xff] %v1459_v38  ;;  %372 = vst [vmem:[#allocation2 + $0x20] sm:$0xff] %v1459_v38 }
  0x74   : > { %373 = vst [vmem:[#allocation2 + $0x10] sm:$0xff] %v1459_v38  ;;  %374 = vst [vmem:[#allocation2 + $0x38] sm:$0xff] %v1459_v38 }
  0x75   : > { %375 = vst [vmem:[#allocation2 + $0x60] sm:$0xff] %v1459_v38  ;;  %376 = vst [vmem:[#allocation2 + $0x70] sm:$0xff] %v1459_v38 }
  0x76   : > { %377 = vst [vmem:[#allocation2 + $0x78] sm:$0xff] %v1459_v38  ;;  %378 = vst [vmem:[#allocation2 + $0x28] sm:$0xff] %v1459_v38 }
  0x77 PF: > { %v1663_v39 = vld [vmem:[%s1660_s1 + $0x8] sm:$0xff]  ;;  %v1666_v40 = vld [vmem:[%s1660_s1 + $0x10] sm:$0xff]  ;;  %v1669_v41 = vld [vmem:[%s1660_s1 + $0x18] sm:$0xff]  ;;  %v512_v63 = vstv %s1653_s25  ;;  %v1460_v22 = vmov 0.0   ;;  %s1840_s12 = sld [smem:[#allocation6 + %s1437_s11]] }
  0x78   : > { %v1156_v42 = vld [vmem:[%s1660_s1 + $0x28] sm:$0xff]  ;;  %v1157_v43 = vld [vmem:[%s1660_s1 + $0x30] sm:$0xff]  ;;  %v1158_v44 = vld [vmem:[%s1660_s1 + $0x38] sm:$0xff]  ;;  %v1193_v48 = vmul.f32 -1.442695, %v1663_v39 }
  0x79   : > { %v1159_v45 = vld [vmem:[%s1660_s1 + $0x40] sm:$0xff]  ;;  %v457_v46 = vmul.f32 0.5, %v1158_v44  ;;  %v1194_v49 = vmul.f32 -1.442695, %v1666_v40  ;;  %v1172_v51 = vld [vmem:[%s1660_s1 + $0xa8] sm:$0xff]  ;;  %v1169_v55 = vld [vmem:[%s1660_s1 + $0x90] sm:$0xff] }
  0x7a   : > { %v458_v47 = vmul.f32 0.5, %v1159_v45  ;;  %v1171_v50 = vld [vmem:[%s1660_s1 + $0xa0] sm:$0xff]  ;;  %v1195_v54 = vmul.f32 -1.442695, %v1669_v41  ;;  %v1170_v56 = vld [vmem:[%s1660_s1 + $0x98] sm:$0xff]  ;;  %v464_v60 = vmul.f32 0.5, %v1172_v51  ;;  %1271 = vpow2.f32 %v1193_v48 }
  0x7b   : > { %v459_v52 = vsub.f32 %v1156_v42, %v457_v46  ;;  %v461_v57 = vadd.f32 %v1156_v42, %v457_v46  ;;  %v463_v59 = vmul.f32 0.5, %v1171_v50  ;;  %v1683_v61 = vld [vmem:[%s1660_s1] sm:$0xff]  ;;  %v1686_v62 = vld [vmem:[%s1660_s1 + $0xf8] sm:$0xff]  ;;  %v1690_v0 = vld [vmem:[%s1660_s1 + $0x110] sm:$0xff]  ;;  %v1696_v3 = vmul.f32 %v1172_v51, %v1171_v50 }
  0x7c   : > { %v460_v53 = vsub.f32 %v1157_v43, %v458_v47  ;;  %v462_v58 = vadd.f32 %v1157_v43, %v458_v47  ;;  %v1693_v1 = vld [vmem:[%s1660_s1 + $0x118] sm:$0xff]  ;;  %v434_v2 = vmul.f32 0.99, %v1686_v62  ;;  %1273 = vpow2.f32 %v1194_v49  ;;  %v1187_v5 = vld [vmem:[%s1660_s1 + $0x120] sm:$0xff]  ;;  %v1188_v6 = vld [vmem:[%s1660_s1 + $0x128] sm:$0xff] }
  0x7d   : > { %v597_v4 = vmax.f32 %v1683_v61, 0.0  ;;  %v465_v7 = vsub.f32 %v1169_v55, %v463_v59  ;;  %v466_v8 = vsub.f32 %v1170_v56, %v464_v60  ;;  %v467_v9 = vadd.f32 %v1169_v55, %v463_v59  ;;  %v1160_v27 = vld [vmem:[%s1660_s1 + $0x48] sm:$0xff]  ;;  %v1177_v28 = vld [vmem:[%s1660_s1 + $0xd0] sm:$0xff]  ;;  %v1178_v34 = vld [vmem:[%s1660_s1 + $0xd8] sm:$0xff]  ;;  %p1202_p5 = scmp.ne.s32.totalorder %s1840_s12, 1 }
  0x7e   : > { %v468_v10 = vadd.f32 %v1170_v56, %v464_v60  ;;  %v469_v11 = vmin.f32 %v459_v52, %v461_v57  ;;  %v470_v12 = vmin.f32 %v460_v53, %v462_v58  ;;  %v471_v13 = vmax.f32 %v459_v52, %v461_v57  ;;  %v1161_v33 = vld [vmem:[%s1660_s1 + $0x50] sm:$0xff]  ;;  %v1162_v50 = vld [vmem:[%s1660_s1 + $0x58] sm:$0xff]  ;;  %v1179_v51 = vld [vmem:[%s1660_s1 + $0xe0] sm:$0xff] }
  0x7f   : > { %1275 = vpow2.f32 %v1195_v54  ;;  %v430_v14 = vmax.f32 %v1690_v0, %v1693_v1  ;;  %vm436_vm0 = vcmp.ne.f32.partialorder %v1690_v0, 0.0  ;;  %vm437_vm1 = vcmp.ne.f32.partialorder %v1693_v1, 0.0  ;;  %v1722_v57 = vld [vmem:[%s1660_s1 + $0x20] sm:$0xff] }
  0x80   : > { %v472_v15 = vmax.f32 %v460_v53, %v462_v58  ;;  %v431_v16 = vmax.f32 %v1187_v5, %v1188_v6  ;;  %v1705_v17 = vadd.f32 0.005, %v434_v2  ;;  %vm438_vm2 = vcmp.ne.f32.partialorder %v1187_v5, 0.0 }
  0x81   : > { %vm439_vm3 = vcmp.ne.f32.partialorder %v1188_v6, 0.0  ;;  %v473_v18 = vmin.f32 %v465_v7, %v467_v9  ;;  %v474_v19 = vmin.f32 %v466_v8, %v468_v10  ;;  %v475_v20 = vmax.f32 %v465_v7, %v467_v9  ;;  %v1163_v9 = vld [vmem:[%s1660_s1 + $0x60] sm:$0xff] }
  0x82   : > { %v476_v21 = vmax.f32 %v466_v8, %v468_v10  ;;  %v1707_v23 = vsel %vm436_vm0, 1.0, %v1460_v22  ;;  %v1709_v24 = vsel %vm437_vm1, 1.0, %v1460_v22  ;;  %v477_v25 = vsub.f32 %v471_v13, %v469_v11  ;;  %v1180_v10 = vld [vmem:[%s1660_s1 + $0xe8] sm:$0xff] }
  0x83   : > { %v478_v26 = vsub.f32 %v472_v15, %v470_v12  ;;  %v480_v29 = vsub.f32 %v475_v20, %v473_v18  ;;  %v483_v31 = vmax.f32 %v469_v11, %v473_v18  ;;  %v484_v32 = vmax.f32 %v470_v12, %v474_v19 }
  0x84   : > { %v481_v30 = vsub.f32 %v476_v21, %v474_v19  ;;  %v485_v36 = vmin.f32 %v471_v13, %v475_v20  ;;  %v486_v37 = vmin.f32 %v472_v15, %v476_v21  ;;  %v497_v38 = vmin.f32 %v469_v11, %v473_v18 }
  0x85   : > { %v479_v35 = vmul.f32 %v478_v26, %v477_v25  ;;  %v498_v43 = vmin.f32 %v470_v12, %v474_v19  ;;  %v499_v44 = vmax.f32 %v471_v13, %v475_v20  ;;  %v500_v45 = vmax.f32 %v472_v15, %v476_v21  ;;  %v1164_v19 = vld [vmem:[%s1660_s1 + $0x68] sm:$0xff]  ;;  %v1181_v20 = vld [vmem:[%s1660_s1 + $0xf0] sm:$0xff] }
  0x86   : > { %v482_v42 = vmul.f32 %v481_v30, %v480_v29  ;;  %v1716_v46 = vsel %vm438_vm2, 1.0, %v1460_v22  ;;  %v487_v47 = vsub.f32 %v485_v36, %v483_v31  ;;  %v488_v48 = vsub.f32 %v486_v37, %v484_v32 }
  0x87   : > { %v519_v49 = vsub.f32 %v1160_v27, %v1177_v28  ;;  %v448_v52 = vmul.f32 0.99, %v1707_v23  ;;  %v501_v53 = vsub.f32 %v499_v44, %v497_v38  ;;  %v502_v54 = vsub.f32 %v500_v45, %v498_v43  ;;  %v1272_v56 = vpop.eup %1271 }
  0x88   : > { %v520_v55 = vsub.f32 %v1161_v33, %v1178_v34  ;;  %v449_v58 = vmul.f32 0.99, %v1709_v24  ;;  %v489_v59 = vmax.f32 %v487_v47, 0.0  ;;  %v490_v60 = vmax.f32 %v488_v48, 0.0 }
  0x89   : > { %v492_v0 = vadd.f32 %v482_v42, %v479_v35  ;;  %v1274_v1 = vpop.eup %1273  ;;  %v1725_v2 = vmax.f32 %v430_v14, %v431_v16  ;;  %v1728_v5 = vsel %vm439_vm3, 1.0, %v1460_v22  ;;  %v503_v7 = vmax.f32 %v501_v53, 0.0 }
  0x8a   : > { %v504_v8 = vmax.f32 %v502_v54, 0.0  ;;  %v450_v11 = vmul.f32 0.99, %v1716_v46  ;;  %v1733_v12 = vmul.f32 %v490_v60, %v489_v59  ;;  %v521_v13 = vsub.f32 %v1162_v50, %v1179_v51 }
  0x8b   : > { %v523_v15 = vmul.f32 %v519_v49, %v519_v49  ;;  %v524_v14 = vmul.f32 %v520_v55, %v520_v55  ;;  %v1196_v6 = vmul.f32 -1.442695, %v1722_v57  ;;  %v549_v16 = vadd.f32 1.0, %v1272_v56  ;;  %v1763_v49 = vld [vmem:[%s1660_s1 + $0x100] sm:$0xff]  ;;  %v1184_v55 = vld [vmem:[%s1660_s1 + $0x108] sm:$0xff] }
  0x8c   : > { %v1276_v18 = vpop.eup %1275  ;;  %v1737_v21 = vmul.f32 %v504_v8, %v503_v7  ;;  %v1740_v22 = vadd.f32 0.0025, %v448_v52  ;;  %v1742_v25 = vadd.f32 0.0025, %v449_v58  ;;  %v1745_v26 = vsub.f32 %v492_v0, %v1733_v12 }
  0x8d   : > { %v1750_v27 = vmul.f32 %v512_v63, %v1696_v3  ;;  %v522_v29 = vsub.f32 %v1163_v9, %v1180_v10  ;;  %1277 = vpow2.f32 %v1196_v6  ;;  %v550_v30 = vadd.f32 1.0, %v1274_v1 }
  0x8e   : > { %v507_v28 = vadd.f32 1e-16, %v1737_v21  ;;  %v494_v31 = vadd.f32 1e-16, %v1745_v26  ;;  %v525_v32 = vmul.f32 %v521_v13, %v521_v13  ;;  %v530_v33 = vsub.f32 %v1164_v19, %v1181_v20 }
  0x8f   : > { %1279 = vrcp.f32 %v549_v16  ;;  %v527_v34 = vadd.f32 %v524_v14, %v523_v15  ;;  %v600_v35 = vand.u32 2147483647, %v1683_v61  ;;  %v1197_v36 = vmul.f32 -1.442695, %v1683_v61 }
  0x90   : > { %1281 = vrcp.f32 %v507_v28  ;;  %v551_v63 = vadd.f32 1.0, %v1276_v18  ;;  %v635_v3 = vand.u32 2147483647, %v1663_v39  ;;  %v636_v37 = vand.u32 2147483647, %v1666_v40 }
  0x91   : > { %1283 = vrcp.f32 %v494_v31  ;;  %v601_v38 = vsub.f32 0.0, %v600_v35  ;;  %v637_v42 = vand.u32 2147483647, %v1669_v41  ;;  %v638_v43 = vand.u32 2147483647, %v1722_v57 }
  0x92   : > { %1285 = vrcp.f32 %v550_v30  ;;  %v526_v44 = vmul.f32 %v522_v29, %v522_v29  ;;  %v598_v45 = vmul.f32 %v1705_v17, %v1683_v61  ;;  %v639_v47 = vsub.f32 0.0, %v635_v3  ;;  %v1165_v29 = vld [vmem:[%s1660_s1 + $0x70] sm:$0xff]  ;;  %v1166_v3 = vld [vmem:[%s1660_s1 + $0x78] sm:$0xff] }
  0x93   : > { %v640_v48 = vsub.f32 0.0, %v636_v37  ;;  %v602_v50 = vmul.f32 1.442695, %v601_v38  ;;  %1287 = vpow2.f32 %v1197_v36  ;;  %v641_v51 = vsub.f32 0.0, %v637_v42  ;;  %v1173_v30 = vld [vmem:[%s1660_s1 + $0xb0] sm:$0xff]  ;;  %v1167_v37 = vld [vmem:[%s1660_s1 + $0x80] sm:$0xff] }
  0x94   : > { %v642_v52 = vsub.f32 0.0, %v638_v43  ;;  %1289 = vrcp.f32 %v551_v63  ;;  %v643_v53 = vmul.f32 1.442695, %v639_v47  ;;  %v2040_v56 = vsub.f32 1.0, %v1686_v62  ;;  %v1174_v38 = vld [vmem:[%s1660_s1 + $0xb8] sm:$0xff]  ;;  %v1175_v47 = vld [vmem:[%s1660_s1 + $0xc0] sm:$0xff] }
  0x95   : > { %v645_v54 = vmul.f32 1.442695, %v640_v48  ;;  %v528_v58 = vadd.f32 %v527_v34, %v525_v32  ;;  %1291 = vpow2.f32 %v602_v50  ;;  %v647_v59 = vmul.f32 1.442695, %v641_v51  ;;  %v1176_v48 = vld [vmem:[%s1660_s1 + $0xc8] sm:$0xff] }
  0x96   : > { %v451_v60 = vmul.f32 0.99, %v1728_v5  ;;  %1293 = vpow2.f32 %v643_v53  ;;  %v649_v0 = vmul.f32 1.442695, %v642_v52  ;;  %v759_v1 = vmul.f32 %v1763_v49, %v1686_v62 }
  0x97   : > { %v1770_v7 = vadd.f32 0.0025, %v450_v11  ;;  %1295 = vpow2.f32 %v645_v54  ;;  %v456_v8 = vadd.f32 %v1184_v55, %v2040_v56  ;;  %v623_v10 = vmax.f32 %v1663_v39, 0.0 }
  0x98   : > { %v1774_v9 = vadd.f32 0.0025, %v451_v60  ;;  %1297 = vpow2.f32 %v647_v59  ;;  %v624_v13 = vmax.f32 %v1666_v40, 0.0  ;;  %v627_v15 = vmul.f32 %v1663_v39, %v1740_v22 }
  0x99   : > { %v628_v18 = vmul.f32 %v1666_v40, %v1742_v25  ;;  %v506_v11 = vsub.f32 %v1737_v21, %v1745_v26  ;;  %v2039_v19 = vsub.f32 2.0, %v1750_v27  ;;  %v1785_v20 = vmul.f32 %v530_v33, %v530_v33 }
  0x9a   : > { %v1789_v14 = vsub.f32 %v597_v4, %v598_v45  ;;  %v1278_v6 = vpop.eup %1277  ;;  %v1791_v16 = vadd.f32 %v528_v58, %v526_v44  ;;  %1299 = vpow2.f32 %v649_v0  ;;  %v625_v39 = vmax.f32 %v1669_v41, 0.0  ;;  %v1168_v45 = vld [vmem:[%s1660_s1 + $0x88] sm:$0xff] }
  0x9b   : > { %v629_v40 = vmul.f32 %v1669_v41, %v1770_v7  ;;  %v552_v21 = vadd.f32 1.0, %v1278_v6  ;;  %v1798_v26 = vmul.f32 %v759_v1, %v456_v8  ;;  %v626_v61 = vmax.f32 %v1722_v57, 0.0  ;;  %v883_v1 = vld [vmem:[#allocation2 + $0x20] sm:$0xff] }
  0x9c   : > { %v1796_v28 = vpop.eup %1279  ;;  %v630_v4 = vmul.f32 %v1722_v57, %v1774_v9  ;;  %v1805_v32 = vsub.f32 %v623_v10, %v627_v15  ;;  %v1807_v41 = vsub.f32 %v624_v13, %v628_v18  ;;  %v805_v34 = vstv %s1651_s20 }
  0x9d   : > { %v1282_v31 = vpop.eup %1281  ;;  %1301 = vrcp.f32 %v552_v21  ;;  %v1819_v44 = vsub.f32 %v625_v39, %v629_v40  ;;  %v806_v50 = vmul.f32 %v1165_v29, %v805_v34  ;;  %v810_v51 = vmul.f32 %v1173_v30, %v805_v34 }
  0x9e   : > { %v1284_v35 = vpop.eup %1283  ;;  %v509_v36 = vmul.f32 %v1282_v31, %v506_v11  ;;  %v761_v52 = vmul.f32 %v1796_v28, %v1707_v23  ;;  %v1828_v54 = vsub.f32 %v626_v61, %v630_v4  ;;  %v1831_v59 = vmul.f32 %v1166_v3, %v805_v34 }
  0x9f   : > { %v1816_v42 = vpop.eup %1285  ;;  %v496_v43 = vmul.f32 %v1284_v35, %v1733_v12  ;;  %v1833_v60 = vmul.f32 %v1167_v37, %v805_v34  ;;  %v811_v0 = vmul.f32 %v1174_v38, %v805_v34  ;;  %v1837_v13 = vmul.f32 %v1168_v45, %v805_v34 }
  0xa0   : > { %v762_v53 = vmul.f32 %v1816_v42, %v1709_v24  ;;  %v1288_v58 = vpop.eup %1287  ;;  %v812_v15 = vmul.f32 %v1175_v47, %v805_v34  ;;  %v813_v18 = vmul.f32 %v1176_v48, %v805_v34  ;;  %v814_v40 = vsub.f32 %v806_v50, %v810_v51 }
  0xa1   : > { %v510_v12 = vsub.f32 %v496_v43, %v509_v36  ;;  %v1835_v8 = vpop.eup %1289  ;;  %v617_v10 = vadd.f32 1.0, %v1288_v58  ;;  %v884_v21 = vadd.f32 %v1686_v62, %v883_v1  ;;  %v815_v34 = vsub.f32 %v1831_v59, %v811_v0 }
  0xa2   : > { %v1292_v11 = vpop.eup %1291  ;;  %v763_v39 = vmul.f32 %v1835_v8, %v1716_v46  ;;  %v765_v30 = vadd.f32 %v762_v53, %v761_v52  ;;  %v816_v43 = vsub.f32 %v1833_v60, %v812_v15  ;;  %v817_v45 = vsub.f32 %v1837_v13, %v813_v18 }
  0xa3   : > { %v515_v6 = vmax.f32 %v510_v12, 0.0  ;;  %v1294_v61 = vpop.eup %1293  ;;  %v604_v4 = vadd.f32 1.0, %v1292_v11  ;;  %v607_v29 = vmul.f32 -0.5, %v1292_v11  ;;  %1303 = vrcp.f32 %v617_v10  ;;  %885 = vst [vmem:[#allocation2 + $0x20] sm:$0xff] %v884_v21 }
  0xa4   : > { %v1296_v31 = vpop.eup %1295  ;;  %v651_v36 = vadd.f32 1.0, %v1294_v61  ;;  %v654_v3 = vmul.f32 -0.5, %v1294_v61  ;;  %v610_v48 = vand.u32 2147483647, %v1292_v11  ;;  %v766_v52 = vadd.f32 %v765_v30, %v763_v39 }
  0xa5   : > { %v516_v35 = vmin.f32 %v515_v6, 1.0  ;;  %v1298_v37 = vpop.eup %1297  ;;  %1305 = vlog2.f32 %v604_v4  ;;  %v608_v38 = vadd.f32 1.0, %v607_v29  ;;  %v660_v50 = vadd.f32 1.0, %v1296_v31 }
  0xa6   : > { %1307 = vlog2.f32 %v651_v36  ;;  %v657_v53 = vand.u32 2147483647, %v1294_v61  ;;  %v663_v58 = vmul.f32 -0.5, %v1296_v31  ;;  %v1848_v12 = vand.u32 2147483647, %v814_v40 }
  0xa7   : > { %v517_v47 = vsub.f32 1.0, %v516_v35  ;;  %v1300_v51 = vpop.eup %1299  ;;  %v655_v0 = vadd.f32 1.0, %v654_v3  ;;  %1309 = vlog2.f32 %v660_v50  ;;  %v669_v1 = vadd.f32 1.0, %v1298_v37 }
  0xa8   : > { %v1854_v60 = vmul.f32 %v1292_v11, %v608_v38  ;;  %v664_v10 = vadd.f32 1.0, %v663_v58  ;;  %v666_v13 = vand.u32 2147483647, %v1296_v31  ;;  %v672_v15 = vmul.f32 -0.5, %v1298_v37 }
  0xa9   : > { %v1852_v59 = vmul.f32 %v517_v47, %v2039_v19  ;;  %vm1860_vm4 = vcmp.lt.f32.partialorder %v610_v48, 0.0004427343  ;;  %1311 = vlog2.f32 %v669_v1  ;;  %v678_v40 = vadd.f32 1.0, %v1300_v51 }
  0xaa   : > { %v1856_v18 = vpop.eup %1301  ;;  %v681_v21 = vmul.f32 -0.5, %v1300_v51  ;;  %vm1866_vm5 = vcmp.lt.f32.partialorder %v657_v53, 0.0004427343  ;;  %v673_v29 = vadd.f32 1.0, %v672_v15  ;;  %v675_v30 = vand.u32 2147483647, %v1298_v37 }
  0xab   : > { %v532_v6 = vadd.f32 %v1791_v16, %v1852_v59  ;;  %v764_v4 = vmul.f32 %v1856_v18, %v1728_v5  ;;  %v656_v36 = vmul.f32 %v1294_v61, %v655_v0  ;;  %1313 = vlog2.f32 %v678_v40 }
  0xac   : > { %v682_v3 = vadd.f32 1.0, %v681_v21  ;;  %v684_v47 = vand.u32 2147483647, %v1300_v51  ;;  %v1871_v48 = vand.u32 2147483647, %v815_v34  ;;  %v665_v1 = vmul.f32 %v1296_v31, %v664_v10 }
  0xad   : > { %v533_v35 = vadd.f32 %v532_v6, %v1785_v20  ;;  %v767_v38 = vadd.f32 %v766_v52, %v764_v4  ;;  %v1873_v50 = vand.u32 2147483647, %v816_v43  ;;  %vm1875_vm6 = vcmp.lt.f32.partialorder %v666_v13, 0.0004427343 }
  0xae   : > { %v1879_v19 = vand.u32 2147483647, %v817_v45  ;;  %v1882_v6 = vmul.f32 %v1298_v37, %v673_v29  ;;  %vm1884_vm7 = vcmp.lt.f32.partialorder %v675_v30, 0.0004427343  ;;  %v1888_v34 = vmul.f32 %v1300_v51, %v682_v3 }
  0xaf   : > { %v534_v58 = vsub.f32 0.0, %v533_v35  ;;  %v768_v15 = vadd.f32 %v767_v38, %v1725_v2  ;;  %vm822_vm8 = vcmp.lt.f32.partialorder %v1848_v12, 1.0  ;;  %vm823_vm9 = vcmp.lt.f32.partialorder %v1871_v48, 1.0 }
  0xb0   : > { %v1304_v43 = vpop.eup %1303  ;;  %v826_v52 = vmul.f32 0.5, %v1848_v12  ;;  %v827_v45 = vmul.f32 0.5, %v1871_v48  ;;  %vm1895_vm10 = vcmp.lt.f32.partialorder %v684_v47, 0.0004427343  ;;  %v828_v51 = vmul.f32 0.5, %v1873_v50  ;;  %v863_v47 = vld [vmem:[#allocation2 + $0x50] sm:$0xff] }
  0xb1   : > { %v535_v31 = vmul.f32 1.442695, %v534_v58  ;;  %v620_v0 = vsub.f32 %v1705_v17, %v1304_v43  ;;  %v769_v37 = vmul.f32 0.5, %v768_v15  ;;  %v829_v13 = vmul.f32 0.5, %v1879_v19  ;;  %v871_v58 = vld [vmem:[#allocation2 + $0x8] sm:$0xff] }
  0xb2   : > { %v1306_v40 = vpop.eup %1305  ;;  %vm824_vm11 = vcmp.lt.f32.partialorder %v1873_v50, 1.0  ;;  %v830_v21 = vmul.f32 %v826_v52, %v1848_v12  ;;  %v831_v4 = vmul.f32 %v827_v45, %v1871_v48  ;;  %vm825_vm12 = vcmp.lt.f32.partialorder %v1879_v19, 1.0  ;;  %v875_v15 = vld [vmem:[#allocation2 + $0x48] sm:$0xff] }
  0xb3   : > { %1315 = vpow2.f32 %v535_v31  ;;  %v1308_v29 = vpop.eup %1307  ;;  %v606_v30 = vmul.f32 0.6931472, %v1306_v40  ;;  %v621_v17 = vmul.f32 %v620_v0, %v620_v0  ;;  %v770_v35 = vmul.f32 %v769_v37, %v1798_v26 }
  0xb4   : > { %v1198_v3 = vadd.f32 -0.5, %v1848_v12  ;;  %v653_v38 = vmul.f32 0.6931472, %v1308_v29  ;;  %v832_v43 = vmul.f32 %v828_v51, %v1873_v50  ;;  %v833_v31 = vmul.f32 %v829_v13, %v1879_v19  ;;  %v1310_v45 = vpop.eup %1309 }
  0xb5   : > { %v1199_v52 = vadd.f32 -0.5, %v1871_v48  ;;  %v612_v0 = vsel %vm1860_vm4, %v1854_v60, %v606_v30  ;;  %v798_v37 = vmul.f32 %v770_v35, %v1852_v59  ;;  %v803_v40 = vmul.f32 %v770_v35, %v1791_v16 }
  0xb6   : > { %v804_v29 = vmul.f32 %v770_v35, %v1785_v20  ;;  %v613_v55 = vadd.f32 %v612_v0, %v1789_v14  ;;  %v659_v51 = vsel %vm1866_vm5, %v656_v36, %v653_v38  ;;  %v662_v57 = vmul.f32 0.6931472, %v1310_v45  ;;  %v1312_v63 = vpop.eup %1311 }
  0xb7   : > { %v1200_v13 = vadd.f32 -0.5, %v1873_v50  ;;  %v687_v56 = vadd.f32 %v659_v51, %v1805_v32  ;;  %v864_v33 = vadd.f32 %v863_v47, %v798_v37  ;;  %v872_v39 = vadd.f32 %v871_v58, %v803_v40 }
  0xb8   : > { %v876_v60 = vadd.f32 %v875_v15, %v804_v29  ;;  %v622_v30 = vmul.f32 %v621_v17, %v613_v55  ;;  %v668_v16 = vsel %vm1875_vm6, %v665_v1, %v662_v57  ;;  %v671_v59 = vmul.f32 0.6931472, %v1312_v63  ;;  %v1314_v14 = vpop.eup %1313  ;;  %v851_v17 = vld [vmem:[#allocation2] sm:$0xff] }
  0xb9   : > { %v1201_v20 = vadd.f32 -0.5, %v1879_v19  ;;  %v688_v11 = vadd.f32 %v668_v16, %v1807_v41  ;;  %v2051_v36 = vsub.f32 1.0, %v1707_v23  ;;  %865 = vst [vmem:[#allocation2 + $0x50] sm:$0xff] %v864_v33  ;;  %873 = vst [vmem:[#allocation2 + $0x8] sm:$0xff] %v872_v39  ;;  %v838_v32 = vsel %vm822_vm8, %v830_v21, %v1198_v3 }
  0xba   : > { %877 = vst [vmem:[#allocation2 + $0x48] sm:$0xff] %v876_v60  ;;  %v839_v55 = vsel %vm823_vm9, %v831_v4, %v1199_v52  ;;  %v771_v57 = vmul.f32 %v1686_v62, %v622_v30  ;;  %v2052_v63 = vsub.f32 1.0, %v1686_v62  ;;  %v677_v41 = vsel %vm1884_vm7, %v1882_v6, %v671_v59  ;;  %v867_v60 = vld [vmem:[#allocation2 + $0x68] sm:$0xff]  ;;  %v859_v59 = vld [vmem:[#allocation2 + $0x18] sm:$0xff] }
  0xbb   : > { %v790_v38 = vmul.f32 %v2051_v36, %v687_v56  ;;  %v680_v53 = vmul.f32 0.6931472, %v1314_v14  ;;  %v689_v33 = vadd.f32 %v677_v41, %v1819_v44  ;;  %v2053_v47 = vsub.f32 1.0, %v1709_v24  ;;  %v879_v36 = vld [vmem:[#allocation2 + $0x40] sm:$0xff] }
  0xbc   : > { %v776_v1 = vmul.f32 %v622_v30, %v2052_v63  ;;  %v799_v21 = vadd.f32 %v688_v11, %v687_v56  ;;  %v840_v48 = vsel %vm824_vm11, %v832_v43, %v1200_v13  ;;  %v842_v3 = vadd.f32 %v839_v55, %v838_v32 }
  0xbd   : > { %v791_v12 = vmul.f32 %v2053_v47, %v688_v11  ;;  %v686_v62 = vsel %vm1895_vm10, %v1888_v34, %v680_v53  ;;  %v2054_v61 = vsub.f32 1.0, %v1716_v46  ;;  %v772_v52 = vmul.f32 %v1763_v49, %v771_v57 }
  0xbe   : > { %v777_v4 = vmul.f32 %v1763_v49, %v776_v1  ;;  %v690_v6 = vadd.f32 %v686_v62, %v1828_v54  ;;  %v800_v15 = vadd.f32 %v799_v21, %v689_v33  ;;  %v841_v50 = vsel %vm825_vm12, %v833_v31, %v1201_v20 }
  0xbf   : > { %v792_v58 = vmul.f32 %v2054_v61, %v689_v33  ;;  %v794_v44 = vadd.f32 %v791_v12, %v790_v38  ;;  %v843_v43 = vadd.f32 %v842_v3, %v840_v48  ;;  %v2055_v0 = vsub.f32 1.0, %v1728_v5 }
  0xc0   : > { %v852_v56 = vadd.f32 %v851_v17, %v777_v4  ;;  %v1316_v45 = vpop.eup %1315  ;;  %v801_v37 = vadd.f32 %v800_v15, %v690_v6  ;;  %v2056_v54 = vsub.f32 2.0, %v1750_v27  ;;  %v847_v27 = vld [vmem:[#allocation2 + $0x30] sm:$0xff] }
  0xc1   : > { %v793_v10 = vmul.f32 %v2055_v0, %v690_v6  ;;  %v795_v34 = vadd.f32 %v794_v44, %v792_v58  ;;  %v773_v29 = vadd.f32 %v1316_v45, %v1725_v2  ;;  %v561_v51 = vmul.f32 %v1316_v45, %v1796_v28 }
  0xc2   : > { %v845_v40 = vmul.f32 %v770_v35, %v2056_v54  ;;  %853 = vst [vmem:[#allocation2] sm:$0xff] %v852_v56  ;;  %v562_v49 = vmul.f32 %v1316_v45, %v1816_v42  ;;  %v563_v19 = vmul.f32 %v1316_v45, %v1835_v8  ;;  %v564_v31 = vmul.f32 %v1316_v45, %v1856_v18 }
  0xc3   : > { %v796_v13 = vadd.f32 %v795_v34, %v793_v10  ;;  %v802_v39 = vmul.f32 %v801_v37, %v1798_v26  ;;  %v844_v30 = vadd.f32 %v843_v43, %v841_v50  ;;  %v774_v16 = vmul.f32 %v773_v29, %v772_v52 }
  0xc4   : > { %v569_v35 = vadd.f32 1e-16, %v561_v51  ;;  %v570_v20 = vadd.f32 1e-16, %v562_v49  ;;  %v571_v28 = vadd.f32 1e-16, %v563_v19 }
  0xc5   : > { %v797_v2 = vmul.f32 %v796_v13, %v1798_v26  ;;  %v775_v14 = vmul.f32 0.5, %v774_v16  ;;  %v572_v11 = vadd.f32 1e-16, %v564_v31  ;;  %v868_v42 = vadd.f32 %v867_v60, %v802_v39 }
  0xc6   : > { %1317 = vrcp.f32 %v569_v35  ;;  %v846_v18 = vmul.f32 %v845_v40, %v844_v30  ;;  %v565_v55 = vsub.f32 1.0, %v561_v51  ;;  %v566_v57 = vsub.f32 1.0, %v562_v49 }
  0xc7   : > { %v860_v8 = vadd.f32 %v859_v59, %v797_v2  ;;  %v848_v38 = vadd.f32 %v847_v27, %v775_v14  ;;  %1319 = vrcp.f32 %v570_v20  ;;  %869 = vst [vmem:[#allocation2 + $0x68] sm:$0xff] %v868_v42  ;;  %v567_v63 = vsub.f32 1.0, %v563_v19 }
  0xc8   : > { %1321 = vrcp.f32 %v571_v28  ;;  %v880_v32 = vadd.f32 %v879_v36, %v846_v18  ;;  %v568_v41 = vsub.f32 1.0, %v564_v31 }
  0xc9   : > { %861 = vst [vmem:[#allocation2 + $0x18] sm:$0xff] %v860_v8  ;;  %849 = vst [vmem:[#allocation2 + $0x30] sm:$0xff] %v848_v38  ;;  %1323 = vrcp.f32 %v572_v11 }
  0xca   : > { %881 = vst [vmem:[#allocation2 + $0x40] sm:$0xff] %v880_v32 }
  0xd3   : > { %v1318_v1 = vpop.eup %1317 }
  0xd4   : > { %v1320_v53 = vpop.eup %1319  ;;  %v574_v17 = vmul.f32 %v1318_v1, %v565_v55 }
  0xd5   : > { %v1322_v33 = vpop.eup %1321  ;;  %v576_v47 = vmul.f32 %v1320_v53, %v566_v57 }
  0xd6   : > { %v1324_v12 = vpop.eup %1323  ;;  %v578_v21 = vmul.f32 %v1322_v33, %v567_v63  ;;  %v581_v48 = vadd.f32 1e-16, %v574_v17 }
  0xd7   : > { %v580_v4 = vmul.f32 %v1324_v12, %v568_v41  ;;  %v582_v62 = vadd.f32 1e-16, %v576_v47 }
  0xd8   : > { %v583_v3 = vadd.f32 1e-16, %v578_v21  ;;  %1325 = vlog2.f32 %v581_v48 }
  0xd9   : > { %v584_v6 = vadd.f32 1e-16, %v580_v4  ;;  %1327 = vlog2.f32 %v582_v62 }
  0xda   : > { %1329 = vlog2.f32 %v583_v3 }
  0xdb   : > { %1331 = vlog2.f32 %v584_v6 }
  0xe5   : > { %v1326_v61 = vpop.eup %1325 }
  0xe6   : > { %v1328_v58 = vpop.eup %1327  ;;  %v586_v44 = vmul.f32 0.6931472, %v1326_v61 }
  0xe7   : > { %v1330_v15 = vpop.eup %1329  ;;  %v588_v52 = vmul.f32 0.6931472, %v1328_v58 }
  0xe8   : > { %v1332_v56 = vpop.eup %1331  ;;  %v590_v50 = vmul.f32 0.6931472, %v1330_v15  ;;  %v593_v43 = vsub.f32 0.0, %v586_v44 }
  0xe9   : > { %v592_v45 = vmul.f32 0.6931472, %v1332_v56  ;;  %v594_v0 = vsub.f32 0.0, %v588_v52 }
  0xea   : > { %v595_v10 = vsub.f32 0.0, %v590_v50  ;;  %v703_v34 = vand.u32 2147483647, %v593_v43  ;;  %v691_v8 = vmax.f32 %v593_v43, 0.0  ;;  %v695_v18 = vmul.f32 %v593_v43, %v1740_v22 }
  0xeb   : > { %v1963_v37 = vsub.f32 0.0, %v592_v45  ;;  %v704_v54 = vand.u32 2147483647, %v594_v0  ;;  %v692_v63 = vmax.f32 %v594_v0, 0.0  ;;  %v696_v1 = vmul.f32 %v594_v0, %v1742_v25 }
  0xec   : > { %v705_v40 = vand.u32 2147483647, %v595_v10  ;;  %v707_v51 = vsub.f32 0.0, %v703_v34  ;;  %v693_v17 = vmax.f32 %v595_v10, 0.0  ;;  %v697_v33 = vmul.f32 %v595_v10, %v1770_v7 }
  0xed   : > { %v706_v29 = vand.u32 2147483647, %v1963_v37  ;;  %v708_v49 = vsub.f32 0.0, %v704_v54  ;;  %v694_v12 = vmax.f32 %v1963_v37, 0.0  ;;  %v699_v21 = vsub.f32 %v691_v8, %v695_v18 }
  0xee   : > { %v709_v19 = vsub.f32 0.0, %v705_v40  ;;  %v711_v13 = vmul.f32 1.442695, %v707_v51  ;;  %v698_v22 = vmul.f32 %v1963_v37, %v1774_v9  ;;  %v700_v58 = vsub.f32 %v692_v63, %v696_v1 }
  0xef   : > { %v710_v31 = vsub.f32 0.0, %v706_v29  ;;  %v713_v39 = vmul.f32 1.442695, %v708_v49  ;;  %v701_v56 = vsub.f32 %v693_v17, %v697_v33 }
  0xf0   : > { %v715_v60 = vmul.f32 1.442695, %v709_v19  ;;  %1333 = vpow2.f32 %v711_v13  ;;  %v702_v10 = vsub.f32 %v694_v12, %v698_v22 }
  0xf1   : > { %v717_v30 = vmul.f32 1.442695, %v710_v31  ;;  %1335 = vpow2.f32 %v713_v39 }
  0xf2   : > { %1337 = vpow2.f32 %v715_v60 }
  0xf3   : > { %1339 = vpow2.f32 %v717_v30 }
  0xfd   : > { %v1334_v16 = vpop.eup %1333 }
  0xfe   : > { %v1336_v59 = vpop.eup %1335  ;;  %v719_v27 = vadd.f32 1.0, %v1334_v16  ;;  %v722_v11 = vmul.f32 -0.5, %v1334_v16  ;;  %v725_v55 = vand.u32 2147483647, %v1334_v16 }
  0xff   : > { %v1338_v35 = vpop.eup %1337  ;;  %v728_v20 = vadd.f32 1.0, %v1336_v59  ;;  %v731_v42 = vmul.f32 -0.5, %v1336_v59  ;;  %v734_v41 = vand.u32 2147483647, %v1336_v59 }
 0x100   : > { %v1340_v2 = vpop.eup %1339  ;;  %1341 = vlog2.f32 %v719_v27  ;;  %v737_v14 = vadd.f32 1.0, %v1338_v35  ;;  %v740_v36 = vmul.f32 -0.5, %v1338_v35  ;;  %v723_v38 = vadd.f32 1.0, %v722_v11  ;;  %v855_v27 = vld [vmem:[#allocation2 + $0x58] sm:$0xff] }
 0x101   : > { %1343 = vlog2.f32 %v728_v20  ;;  %v746_v28 = vadd.f32 1.0, %v1340_v2  ;;  %v749_v32 = vmul.f32 -0.5, %v1340_v2  ;;  %v732_v57 = vadd.f32 1.0, %v731_v42 }
 0x102   : > { %1345 = vlog2.f32 %v737_v14  ;;  %v741_v53 = vadd.f32 1.0, %v740_v36  ;;  %v743_v47 = vand.u32 2147483647, %v1338_v35  ;;  %v724_v48 = vmul.f32 %v1334_v16, %v723_v38 }
 0x103   : > { %1347 = vlog2.f32 %v746_v28  ;;  %v750_v4 = vadd.f32 1.0, %v749_v32  ;;  %vm1972_vm13 = vcmp.lt.f32.partialorder %v725_v55, 0.0004427343  ;;  %v733_v25 = vmul.f32 %v1336_v59, %v732_v57 }
 0x104   : > { %v752_v6 = vand.u32 2147483647, %v1340_v2  ;;  %vm1976_vm14 = vcmp.lt.f32.partialorder %v734_v41, 0.0004427343  ;;  %v742_v15 = vmul.f32 %v1338_v35, %v741_v53  ;;  %vm744_vm15 = vcmp.lt.f32.partialorder %v743_v47, 0.0004427343 }
 0x105   : > { %v751_v45 = vmul.f32 %v1340_v2, %v750_v4 }
 0x106   : > { %vm753_vm0 = vcmp.lt.f32.partialorder %v752_v6, 0.0004427343 }
 0x10d   : > { %v1342_v62 = vpop.eup %1341 }
 0x10e   : > { %v1344_v61 = vpop.eup %1343  ;;  %v721_v44 = vmul.f32 0.6931472, %v1342_v62 }
 0x10f   : > { %v1346_v52 = vpop.eup %1345  ;;  %v730_v50 = vmul.f32 0.6931472, %v1344_v61 }
 0x110   : > { %v727_v9 = vsel %vm1972_vm13, %v724_v48, %v721_v44  ;;  %v739_v43 = vmul.f32 0.6931472, %v1346_v52  ;;  %v1348_v0 = vpop.eup %1347 }
 0x111   : > { %v736_v34 = vsel %vm1976_vm14, %v733_v25, %v730_v50  ;;  %v755_v37 = vadd.f32 %v727_v9, %v699_v21  ;;  %v748_v40 = vmul.f32 0.6931472, %v1348_v0 }
 0x112   : > { %v745_v54 = vsel %vm744_vm15, %v742_v15, %v739_v43  ;;  %v756_v29 = vadd.f32 %v736_v34, %v700_v58 }
 0x113   : > { %v757_v51 = vadd.f32 %v745_v54, %v701_v56  ;;  %v778_v49 = vmul.f32 %v1707_v23, %v755_v37  ;;  %v754_v19 = vsel %vm753_vm0, %v751_v45, %v748_v40 }
 0x114   : > { %v779_v31 = vmul.f32 %v1709_v24, %v756_v29  ;;  %v758_v13 = vadd.f32 %v754_v19, %v702_v10 }
 0x115   : > { %v780_v39 = vmul.f32 %v1716_v46, %v757_v51 }
 0x116   : > { %v782_v60 = vadd.f32 %v779_v31, %v778_v49  ;;  %v781_v30 = vmul.f32 %v1728_v5, %v758_v13 }
 0x118   : > { %v783_v16 = vadd.f32 %v782_v60, %v780_v39 }
 0x11a   : > { %v784_v59 = vadd.f32 %v783_v16, %v781_v30 }
 0x11c   : > { %v785_v35 = vmul.f32 %v784_v59, %v1798_v26  ;;  %890 = sbr.rel (%p1202_p5) target bundleno = 323 (0x143), region = 70 }
 0x11e   : > { %v856_v20 = vadd.f32 %v855_v27, %v785_v35 }
 0x120   : > { %857 = vst [vmem:[#allocation2 + $0x58] sm:$0xff] %v856_v20 }
 0x121   : > { %v891_v23 = vld [vmem:[#allocation2 + $0x30] sm:$0xff]  ;;  %v892_v2 = vld [vmem:[#allocation2] sm:$0xff]  ;;  %v894_v24 = vld [vmem:[#allocation2 + $0x18] sm:$0xff]  ;;  %vm1019_vm1 = vcmask 1041409   ;;  %vm1021_vm2 = vcmask 1042434   ;;  %vm1023_vm3 = vcmask 1043459  }
 0x122   : > { %v895_v28 = vld [vmem:[#allocation2 + $0x50] sm:$0xff]  ;;  %v896_v11 = vld [vmem:[#allocation2 + $0x68] sm:$0xff]  ;;  %v907_v46 = vrot.slane %v891_v23, 4  ;;  %v913_v42 = vrot.slane %v892_v2, 4  ;;  %v925_v18 = vrot.slane %v894_v24, 4  ;;  %v899_v43 = vld [vmem:[#allocation2 + $0x40] sm:$0xff] }
 0x123   : > { %v897_v5 = vld [vmem:[#allocation2 + $0x8] sm:$0xff]  ;;  %v931_v38 = vrot.slane %v895_v28, 4  ;;  %v937_v32 = vrot.slane %v896_v11, 4  ;;  %v900_v45 = vld [vmem:[#allocation2 + $0x20] sm:$0xff]  ;;  %v901_v0 = vld [vmem:[#allocation2 + $0x10] sm:$0xff]  ;;  %v955_v30 = vrot.slane %v899_v43, 4 }
 0x124   : > { %v898_v8 = vld [vmem:[#allocation2 + $0x48] sm:$0xff]  ;;  %v908_v26 = vadd.f32 %v907_v46, %v891_v23  ;;  %v914_v55 = vadd.f32 %v913_v42, %v892_v2  ;;  %v943_v63 = vrot.slane %v897_v5, 4  ;;  %v926_v1 = vadd.f32 %v925_v18, %v894_v24  ;;  %v902_v34 = vld [vmem:[#allocation2 + $0x38] sm:$0xff]  ;;  %v903_v37 = vld [vmem:[#allocation2 + $0x60] sm:$0xff] }
 0x125   : > { %v932_v41 = vadd.f32 %v931_v38, %v895_v28  ;;  %v938_v53 = vadd.f32 %v937_v32, %v896_v11  ;;  %v949_v17 = vrot.slane %v898_v8, 4  ;;  %v904_v54 = vld [vmem:[#allocation2 + $0x70] sm:$0xff]  ;;  %v905_v51 = vld [vmem:[#allocation2 + $0x78] sm:$0xff]  ;;  %v906_v39 = vld [vmem:[#allocation2 + $0x28] sm:$0xff]  ;;  %v961_v16 = vrot.slane %v900_v45, 4 }
 0x126   : > { %v909_v33 = vrot.slane %v908_v26, 2  ;;  %v915_v47 = vrot.slane %v914_v55, 2  ;;  %v944_v21 = vadd.f32 %v943_v63, %v897_v5  ;;  %v927_v48 = vrot.slane %v926_v1, 2 }
 0x127   : > { %v893_v14 = vld [vmem:[#allocation2 + $0x58] sm:$0xff]  ;;  %v933_v4 = vrot.slane %v932_v41, 2  ;;  %v939_v62 = vrot.slane %v938_v53, 2  ;;  %v950_v22 = vadd.f32 %v949_v17, %v898_v8  ;;  %v967_v59 = vrot.slane %v901_v0, 4 }
 0x128   : > { %v919_v36 = vrot.slane %v893_v14, 4  ;;  %v910_v3 = vadd.f32 %v909_v33, %v908_v26  ;;  %v916_v25 = vadd.f32 %v915_v47, %v914_v55  ;;  %v945_v61 = vrot.slane %v944_v21, 2 }
 0x129   : > { %v928_v58 = vadd.f32 %v927_v48, %v926_v1  ;;  %v1990_v44 = vadd.f32 %v933_v4, %v932_v41  ;;  %v1992_v7 = vadd.f32 %v939_v62, %v938_v53  ;;  %v951_v15 = vrot.slane %v950_v22, 2 }
 0x12a   : > { %v920_v57 = vadd.f32 %v919_v36, %v893_v14  ;;  %v911_v52 = vrot.slane %v910_v3, 1  ;;  %v917_v56 = vrot.slane %v916_v25, 1  ;;  %v1994_v9 = vadd.f32 %v945_v61, %v944_v21 }
 0x12b   : > { %v929_v10 = vrot.slane %v928_v58, 1  ;;  %v935_v40 = vrot.slane %v1990_v44, 1  ;;  %v941_v29 = vrot.slane %v1992_v7, 1  ;;  %v952_v13 = vadd.f32 %v951_v15, %v950_v22 }
 0x12c   : > { %v921_v12 = vrot.slane %v920_v57, 2  ;;  %v912_v49 = vadd.f32 %v911_v52, %v910_v3  ;;  %v918_v19 = vadd.f32 %v917_v56, %v916_v25  ;;  %v947_v60 = vrot.slane %v1994_v9, 1 }
 0x12d   : > { %v930_v27 = vadd.f32 %v929_v10, %v928_v58  ;;  %v973_v35 = vrot.slane %v902_v34, 4  ;;  %v979_v20 = vrot.slane %v903_v37, 4  ;;  %v985_v23 = vrot.slane %v904_v54, 4 }
 0x12e   : > { %v922_v6 = vadd.f32 %v921_v12, %v920_v57  ;;  %v956_v2 = vadd.f32 %v955_v30, %v899_v43  ;;  %v962_v14 = vadd.f32 %v961_v16, %v900_v45  ;;  %v968_v24 = vadd.f32 %v967_v59, %v901_v0 }
 0x12f   : > { %v991_v28 = vrot.slane %v905_v51, 4  ;;  %v974_v11 = vadd.f32 %v973_v35, %v902_v34  ;;  %v980_v46 = vadd.f32 %v979_v20, %v903_v37  ;;  %v986_v42 = vadd.f32 %v985_v23, %v904_v54 }
 0x130   : > { %v923_v50 = vrot.slane %v922_v6, 1  ;;  %v997_v36 = vrot.slane %v906_v39, 4  ;;  %v957_v5 = vrot.slane %v956_v2, 2  ;;  %v963_v8 = vrot.slane %v962_v14, 2 }
 0x131   : > { %v969_v18 = vrot.slane %v968_v24, 2  ;;  %v992_v38 = vadd.f32 %v991_v28, %v905_v51  ;;  %v975_v32 = vrot.slane %v974_v11, 2  ;;  %v981_v26 = vrot.slane %v980_v46, 2 }
 0x132   : > { %v924_v31 = vadd.f32 %v923_v50, %v922_v6  ;;  %v987_v55 = vrot.slane %v986_v42, 2  ;;  %v998_v57 = vadd.f32 %v997_v36, %v906_v39  ;;  %v958_v63 = vadd.f32 %v957_v5, %v956_v2 }
 0x133   : > { %v964_v1 = vadd.f32 %v963_v8, %v962_v14  ;;  %v970_v41 = vadd.f32 %v969_v18, %v968_v24  ;;  %v993_v53 = vrot.slane %v992_v38, 2  ;;  %v976_v17 = vadd.f32 %v975_v32, %v974_v11 }
 0x134   : > { %v982_v33 = vadd.f32 %v981_v26, %v980_v46  ;;  %v988_v47 = vadd.f32 %v987_v55, %v986_v42  ;;  %v999_v12 = vrot.slane %v998_v57, 2  ;;  %v959_v21 = vrot.slane %v958_v63, 1 }
 0x135   : > { %v965_v48 = vrot.slane %v964_v1, 1  ;;  %v971_v4 = vrot.slane %v970_v41, 1  ;;  %v994_v62 = vadd.f32 %v993_v53, %v992_v38  ;;  %v953_v22 = vrot.slane %v952_v13, 1 }
 0x136   : > { %v977_v3 = vrot.slane %v976_v17, 1  ;;  %v983_v25 = vrot.slane %v982_v33, 1  ;;  %v1000_v6 = vadd.f32 %v999_v12, %v998_v57  ;;  %v936_v61 = vadd.f32 %v935_v40, %v1990_v44 }
 0x137   : > { %v960_v58 = vadd.f32 %v959_v21, %v958_v63  ;;  %v966_v15 = vadd.f32 %v965_v48, %v964_v1  ;;  %v989_v52 = vrot.slane %v988_v47, 1  ;;  %v942_v56 = vadd.f32 %v941_v29, %v1992_v7 }
 0x138   : > { %v948_v50 = vadd.f32 %v947_v60, %v1994_v9  ;;  %v972_v43 = vadd.f32 %v971_v4, %v970_v41  ;;  %v995_v45 = vrot.slane %v994_v62, 1  ;;  %v978_v0 = vadd.f32 %v977_v3, %v976_v17 }
 0x139   : > { %v1001_v10 = vrot.slane %v1000_v6, 1  ;;  %v1020_v34 = vsel %vm1019_vm1, %v918_v19, %v912_v49  ;;  %vm1025_vm4 = vcmask 1044484   ;;  %v954_v37 = vadd.f32 %v953_v22, %v952_v13 }
 0x13a   : > { %v984_v54 = vadd.f32 %v983_v25, %v982_v33  ;;  %v1022_v51 = vsel %vm1021_vm2, %v924_v31, %v1020_v34  ;;  %vm1027_vm5 = vcmask 1045509   ;;  %v990_v44 = vadd.f32 %v989_v52, %v988_v47 }
 0x13b   : > { %v1024_v40 = vsel %vm1023_vm3, %v930_v27, %v1022_v51  ;;  %vm1029_vm6 = vcmask 1046534   ;;  %v1033_v7 = vsel %vm1019_vm1, %v966_v15, %v960_v58  ;;  %v996_v9 = vadd.f32 %v995_v45, %v994_v62 }
 0x13c   : > { %v1026_v29 = vsel %vm1025_vm4, %v936_v61, %v1024_v40  ;;  %vm1031_vm7 = vcmask 1047559   ;;  %v1034_v49 = vsel %vm1021_vm2, %v972_v43, %v1033_v7  ;;  %v1002_v19 = vadd.f32 %v1001_v10, %v1000_v6 }
 0x13d   : > { %v1028_v13 = vsel %vm1027_vm5, %v942_v56, %v1026_v29  ;;  %v1035_v39 = vsel %vm1023_vm3, %v978_v0, %v1034_v49 }
 0x13e   : > { %v1030_v31 = vsel %vm1029_vm6, %v948_v50, %v1028_v13  ;;  %v1036_v60 = vsel %vm1025_vm4, %v984_v54, %v1035_v39 }
 0x13f   : > { %v1032_v30 = vsel %vm1031_vm7, %v954_v37, %v1030_v31  ;;  %v1037_v16 = vsel %vm1027_vm5, %v990_v44, %v1036_v60 }
 0x140   : > { %v1038_v59 = vsel %vm1029_vm6, %v996_v9, %v1037_v16  ;;  %1042 = vst [vmem:[%s1658_s0] sm:$0xff] %v1032_v30 }
 0x141   : > { %v1039_v27 = vsel %vm1031_vm7, %v1002_v19, %v1038_v59 }
 0x142   : > { %1043 = vst [vmem:[%s1658_s0 + $0x8] sm:$0xff] %v1039_v27 }
 0x143 PF: > { %s33_s15 = sadd.s32 1, %s1453_s15   ;;  %s2061_s3 = smov %s1433_s10 }
 0x144   : > { %p30_p6 = scmp.ge.s32.totalorder %s33_s15, 8   ;;  %s2062_s10 = smov %s1554_s22 }
 0x145   : > { %s2063_s11 = smov %s1445_s13  ;;  %s2064_s12 = smov %s1449_s14 }
 0x146   : > { %s2065_s13 = smov %s2068_s16  ;;  %s2066_s14 = smov %s2072_s17 }
 0x147   :  { %32 = sbr.rel (!%p30_p6) target bundleno = 50 (0x32), region = 127 }

</bundles_post_ra>
